<compile_context>
chip_gen: v7x
topology: tpu7x:2x2x1
jax: 0.10.0
libtpu: 0.0.40
codegen_flags: <defaults>
</compile_context>

<pallas_src>
import functools

import jax
import jax.numpy as jnp
from jax import lax
from jax.experimental import pallas as pl
from jax.experimental.pallas import tpu as pltpu

_VMEM = pltpu.MemorySpace.VMEM


# ------------------------------ fused forward kernel ------------------------------
def _fused_lstm_kernel(*refs, num_layers, batch, unroll):
    # Positional ref layout:
    #   inputs : emb2d, h0, c0, fc_w_t, fc_b, [w_ih_t, w_hh_t, bias] * num_layers
    #   outputs: sig, h_n, c_n
    #   scratch: xp (T*B, 4H), seq (T*B, H)
    emb_ref, h0_ref, c0_ref, fcw_ref, fcb_ref = refs[:5]
    layer_refs = refs[5:5 + 3 * num_layers]
    sig_ref, hn_ref, cn_ref = refs[5 + 3 * num_layers:8 + 3 * num_layers]
    xp_ref, seq_ref = refs[8 + 3 * num_layers:]

    B = batch
    TB = emb_ref.shape[0]
    T = TB // B
    H = hn_ref.shape[-1]

    h_fin = None
    for l in range(num_layers):
        # Hoist weight loads / bf16 casts out of the time loop.
        w_ih = layer_refs[3 * l][...].astype(jnp.bfloat16)       # (D_in, 4H)
        w_hh = layer_refs[3 * l + 1][...].astype(jnp.bfloat16)   # (H, 4H)
        bias = layer_refs[3 * l + 2][...]                        # (1, 4H) f32

        # Phase 1: hoisted input projection for ALL timesteps (one MXU GEMM).
        x2d = (emb_ref[...] if l == 0 else seq_ref[...]).astype(jnp.bfloat16)
        xp_ref[...] = jnp.dot(x2d, w_ih,
                              preferred_element_type=jnp.float32) + bias

        last_layer = (l == num_layers - 1)

        # Phase 2: sequential recurrence; h/c carried in vregs (f32).
        def step(t, carry):
            h, c = carry                                          # (B, H) f32
            rows = pl.ds(t * B, B)
            gates = xp_ref[rows, :] + jnp.dot(
                h.astype(jnp.bfloat16), w_hh,
                preferred_element_type=jnp.float32)               # (B, 4H) f32
            # One sigmoid pass over all 4H lanes (PyTorch gate order i,f,g,o),
            # tanh only on the g slice; cell update stays in f32.
            sg = jax.nn.sigmoid(gates)
            i_g = sg[:, 0 * H:1 * H]
            f_g = sg[:, 1 * H:2 * H]
            o_g = sg[:, 3 * H:4 * H]
            g_g = jnp.tanh(gates[:, 2 * H:3 * H])
            c_new = f_g * c + i_g * g_g
            h_new = o_g * jnp.tanh(c_new)
            if not last_layer:
                # Only non-final layers need their full output sequence (it is
                # the next layer's input); the head only needs h_T.
                seq_ref[rows, :] = h_new
            return h_new, c_new

        h_fin, c_fin = lax.fori_loop(0, T, step, (h0_ref[l], c0_ref[l]),
                                     unroll=unroll)
        # Final states written exactly once per layer.
        hn_ref[l] = h_fin
        cn_ref[l] = c_fin

    # FC + sigmoid head only on the final-layer last hidden state (== lstm_out[:, -1]).
    logits = jnp.dot(h_fin.astype(jnp.bfloat16),
                     fcw_ref[...].astype(jnp.bfloat16),
                     preferred_element_type=jnp.float32) + fcb_ref[...]
    sig_ref[...] = jax.nn.sigmoid(logits)


# ---------------------------------- full forward ----------------------------------
def lstm_architecture_forward(params, x, hidden_state):
    """Mirrors LSTM_architecture.forward (inference: dropout == identity).

    x: (B, T) int32 token ids
    hidden_state: (h0, c0), each (num_layers, B, H)
    returns (sig_out (B,), (h_n, c_n))
    """
    h0, c0 = hidden_state
    B, T = x.shape
    L, _, H = h0.shape
    O = params["fc_w_t"].shape[1]

    # Embedding lookup (gather) stays in plain JAX; table lives in HBM.
    emb = params["embedding"][x]                          # (B, T, E)
    E = emb.shape[-1]
    emb2d = jnp.transpose(emb, (1, 0, 2)).reshape(T * B, E)   # time-major, 2D

    layer_args = []
    for lp in params["lstm"]:
        layer_args += [lp["w_ih_t"], lp["w_hh_t"], lp["bias"]]

    # TODO(synk): dropout between LSTM layers and before fc is identity here
    # (inference semantics); torch's stochastic dropout RNG is not reproduced.
    kernel = functools.partial(_fused_lstm_kernel, num_layers=L, batch=B,
                               unroll=bool(T <= 32))
    n_in = 5 + 3 * L
    sig, h_n, c_n = pl.pallas_call(
        kernel,
        out_shape=(
            jax.ShapeDtypeStruct((B, O), jnp.float32),
            jax.ShapeDtypeStruct((L, B, H), jnp.float32),
            jax.ShapeDtypeStruct((L, B, H), jnp.float32),
        ),
        in_specs=[pl.BlockSpec(memory_space=_VMEM)] * n_in,
        out_specs=(
            pl.BlockSpec(memory_space=_VMEM),
            pl.BlockSpec(memory_space=_VMEM),
            pl.BlockSpec(memory_space=_VMEM),
        ),
        scratch_shapes=[
            pltpu.VMEM((T * B, 4 * H), jnp.float32),   # hoisted gate projections
            pltpu.VMEM((T * B, H), jnp.float32),       # inter-layer activations
        ],
    )(emb2d, h0, c0, params["fc_w_t"], params["fc_b"], *layer_args)

    # torch: sigmoid(fc(out)).view(B, -1)[:, -1]  ==  last timestep, last unit.
    sig_out = sig[:, -1]
    return sig_out, (h_n, c_n)


# ----------------------------------- param init ------------------------------------
def init_params(key, vocab_size, output_size, embedding_dim, hidden_dim,
                num_layers):
    """Weights stored PRE-TRANSPOSED for lane-dense kernel layouts.

    w_ih_t: (D_in, 4H), w_hh_t: (H, 4H), gate order i,f,g,o along 4H (PyTorch).
    bias = b_ih + b_hh as (1, 4H). fc_w_t: (H, O), fc_b: (1, O).
    """
    keys = jax.random.split(key, 3 + 4 * num_layers)
    params = {
        "embedding": 0.1 * jax.random.normal(
            keys[0], (vocab_size, embedding_dim), jnp.float32),
        "fc_w_t": 0.1 * jax.random.normal(
            keys[1], (hidden_dim, output_size), jnp.float32),
        "fc_b": 0.1 * jax.random.normal(
            keys[2], (1, output_size), jnp.float32),
        "lstm": [],
    }
    k = 3
    for l in range(num_layers):
        d_in = embedding_dim if l == 0 else hidden_dim
        w_ih_t = 0.1 * jax.random.normal(keys[k], (d_in, 4 * hidden_dim),
                                         jnp.float32)
        w_hh_t = 0.1 * jax.random.normal(keys[k + 1], (hidden_dim, 4 * hidden_dim),
                                         jnp.float32)
        b_ih = 0.1 * jax.random.normal(keys[k + 2], (4 * hidden_dim,), jnp.float32)
        b_hh = 0.1 * jax.random.normal(keys[k + 3], (4 * hidden_dim,), jnp.float32)
        params["lstm"].append({
            "w_ih_t": w_ih_t,
            "w_hh_t": w_hh_t,
            "bias": (b_ih + b_hh).reshape(1, 4 * hidden_dim),
        })
        k += 4
    return params


# ----------------------------- pure-JAX f32 reference ------------------------------
def _reference_forward(params, x, hidden_state):
    h0, c0 = hidden_state
    B, T = x.shape
    emb = params["embedding"][x]                    # (B, T, E)
    layer_in = emb
    hs, cs = [], []
    for l, lp in enumerate(params["lstm"]):
        h, c = h0[l], c0[l]
        H = h.shape[-1]
        outs = []
        for t in range(T):
            g = layer_in[:, t, :] @ lp["w_ih_t"] + h @ lp["w_hh_t"] + lp["bias"]
            i_g = jax.nn.sigmoid(g[:, 0 * H:1 * H])
            f_g = jax.nn.sigmoid(g[:, 1 * H:2 * H])
            o_g = jax.nn.sigmoid(g[:, 3 * H:4 * H])
            g_g = jnp.tanh(g[:, 2 * H:3 * H])
            c = f_g * c + i_g * g_g
            h = o_g * jnp.tanh(c)
            outs.append(h)
        layer_in = jnp.stack(outs, axis=1)
        hs.append(h)
        cs.append(c)
    logits = hs[-1] @ params["fc_w_t"] + params["fc_b"]
    sig = jax.nn.sigmoid(logits)
    return sig[:, -1], (jnp.stack(hs), jnp.stack(cs))


if __name__ == "__main__":
    vocab_size = 50
    output_size = 1
    embedding_dim = 32
    hidden_dim = 32
    num_layers = 2
    batch = 2
    seq = 8

    key = jax.random.PRNGKey(0)
    pkey, xkey = jax.random.split(key)
    params = init_params(pkey, vocab_size, output_size, embedding_dim,
                         hidden_dim, num_layers)

    x = jax.random.randint(xkey, (batch, seq), 0, vocab_size, dtype=jnp.int32)
    h0 = jnp.zeros((num_layers, batch, hidden_dim), jnp.float32)
    c0 = jnp.zeros((num_layers, batch, hidden_dim), jnp.float32)

    fwd = jax.jit(lstm_architecture_forward)
    sig_out, (h_n, c_n) = fwd(params, x, (h0, c0))
    jax.block_until_ready((sig_out, h_n, c_n))

    # Shape / sanity checks.
    assert sig_out.shape == (batch,)
    assert h_n.shape == (num_layers, batch, hidden_dim)
    assert c_n.shape == (num_layers, batch, hidden_dim)
    assert bool(jnp.all(jnp.isfinite(sig_out)))

    # Numerical check vs pure-JAX f32 reference (loose tol: bf16 MXU operands).
    ref_sig, (ref_h, ref_c) = _reference_forward(params, x, (h0, c0))
    assert bool(jnp.allclose(sig_out, ref_sig, atol=5e-2, rtol=5e-2))
    assert bool(jnp.allclose(h_n, ref_h, atol=5e-2, rtol=5e-2))
    assert bool(jnp.allclose(c_n, ref_c, atol=5e-2, rtol=5e-2))

    print("KERNEL_OK")
</pallas_src>

<mosaic_0001>
module attributes {stable_mosaic.version = 11 : i64} {
  func.func @_fused_lstm_kernel(%arg0: memref<16x32xf32, #tpu.memory_space<vmem>>, %arg1: memref<2x2x32xf32, #tpu.memory_space<vmem>>, %arg2: memref<2x2x32xf32, #tpu.memory_space<vmem>>, %arg3: memref<32x1xf32, #tpu.memory_space<vmem>>, %arg4: memref<1x1xf32, #tpu.memory_space<vmem>>, %arg5: memref<32x128xf32, #tpu.memory_space<vmem>>, %arg6: memref<32x128xf32, #tpu.memory_space<vmem>>, %arg7: memref<1x128xf32, #tpu.memory_space<vmem>>, %arg8: memref<32x128xf32, #tpu.memory_space<vmem>>, %arg9: memref<32x128xf32, #tpu.memory_space<vmem>>, %arg10: memref<1x128xf32, #tpu.memory_space<vmem>>, %arg11: memref<2x1xf32, #tpu.memory_space<vmem>>, %arg12: memref<2x2x32xf32, #tpu.memory_space<vmem>>, %arg13: memref<2x2x32xf32, #tpu.memory_space<vmem>>, %arg14: memref<16x128xf32, #tpu.memory_space<vmem>>, %arg15: memref<16x32xf32, #tpu.memory_space<vmem>>) attributes {dimension_semantics = [], scalar_prefetch = 0 : i64, scratch_operands = 2 : i64, tpu.core_type = #tpu.core_type<tc>} {
    %c0 = arith.constant 0 : index
    %c0_0 = arith.constant 0 : index
    %0 = vector.load %arg5[%c0, %c0_0] : memref<32x128xf32, #tpu.memory_space<vmem>>, vector<32x128xf32>
    %1 = arith.truncf %0 : vector<32x128xf32> to vector<32x128xbf16>
    %c0_1 = arith.constant 0 : index
    %c0_2 = arith.constant 0 : index
    %2 = vector.load %arg6[%c0_1, %c0_2] : memref<32x128xf32, #tpu.memory_space<vmem>>, vector<32x128xf32>
    %3 = arith.truncf %2 : vector<32x128xf32> to vector<32x128xbf16>
    %c0_3 = arith.constant 0 : index
    %c0_4 = arith.constant 0 : index
    %4 = vector.load %arg7[%c0_3, %c0_4] : memref<1x128xf32, #tpu.memory_space<vmem>>, vector<1x128xf32>
    %c0_5 = arith.constant 0 : index
    %c0_6 = arith.constant 0 : index
    %5 = vector.load %arg0[%c0_5, %c0_6] : memref<16x32xf32, #tpu.memory_space<vmem>>, vector<16x32xf32>
    %6 = arith.truncf %5 : vector<16x32xf32> to vector<16x32xbf16>
    %cst = arith.constant dense<0.000000e+00> : vector<16x128xf32>
    %7 = tpu.matmul %6, %1, %cst {dimension_numbers = #tpu.dot_dimension_numbers<[1], [0], [0], [1], [0, 0, 1, 1], [], []>} : vector<16x32xbf16>, vector<32x128xbf16>, vector<16x128xf32> -> vector<16x128xf32>
    %8 = vector.broadcast %4 : vector<1x128xf32> to vector<16x128xf32>
    %9 = arith.addf %7, %8 : vector<16x128xf32>
    %c0_7 = arith.constant 0 : index
    %c0_8 = arith.constant 0 : index
    %10 = vector.load %arg14[%c0_7, %c0_8] : memref<16x128xf32, #tpu.memory_space<vmem>>, vector<16x128xf32>
    tpu.vector_store %arg14[%c0_7, %c0_8], %9 {strides = array<i32>} : memref<16x128xf32, #tpu.memory_space<vmem>>, vector<16x128xf32>,
    %c0_9 = arith.constant 0 : index
    %c0_10 = arith.constant 0 : index
    %c0_11 = arith.constant 0 : index
    %11 = vector.load %arg1[%c0_9, %c0_10, %c0_11] : memref<2x2x32xf32, #tpu.memory_space<vmem>>, vector<1x2x32xf32>
    %12 = vector.shape_cast %11 : vector<1x2x32xf32> to vector<2x32xf32>
    %c0_12 = arith.constant 0 : index
    %c0_13 = arith.constant 0 : index
    %c0_14 = arith.constant 0 : index
    %13 = vector.load %arg2[%c0_12, %c0_13, %c0_14] : memref<2x2x32xf32, #tpu.memory_space<vmem>>, vector<1x2x32xf32>
    %14 = vector.shape_cast %13 : vector<1x2x32xf32> to vector<2x32xf32>
    %c0_i32 = arith.constant 0 : i32
    %c2_i32 = arith.constant 2 : i32
    %15 = arith.muli %c0_i32, %c2_i32 : i32
    %16 = arith.index_cast %15 : i32 to index
    %c0_15 = arith.constant 0 : index
    %17 = vector.load %arg14[%16, %c0_15] : memref<16x128xf32, #tpu.memory_space<vmem>>, vector<2x128xf32>
    %18 = arith.truncf %12 : vector<2x32xf32> to vector<2x32xbf16>
    %cst_16 = arith.constant dense<0.000000e+00> : vector<2x128xf32>
    %19 = tpu.matmul %18, %3, %cst_16 {dimension_numbers = #tpu.dot_dimension_numbers<[1], [0], [0], [1], [0, 0, 1, 1], [], []>} : vector<2x32xbf16>, vector<32x128xbf16>, vector<2x128xf32> -> vector<2x128xf32>
    %20 = arith.addf %17, %19 : vector<2x128xf32>
    %21 = arith.negf %20 : vector<2x128xf32>
    %22 = math.exp %21 : vector<2x128xf32>
    %cst_17 = arith.constant 1.000000e+00 : f32
    %23 = vector.broadcast %cst_17 : f32 to vector<2x128xf32>
    %24 = arith.addf %23, %22 : vector<2x128xf32>
    %25 = arith.divf %23, %24 : vector<2x128xf32>
    %26 = vector.extract_strided_slice %25 {offsets = [0, 0], sizes = [2, 32], strides = [1, 1]} : vector<2x128xf32> to vector<2x32xf32>
    %27 = vector.extract_strided_slice %25 {offsets = [0, 32], sizes = [2, 32], strides = [1, 1]} : vector<2x128xf32> to vector<2x32xf32>
    %28 = vector.extract_strided_slice %25 {offsets = [0, 96], sizes = [2, 32], strides = [1, 1]} : vector<2x128xf32> to vector<2x32xf32>
    %29 = vector.extract_strided_slice %20 {offsets = [0, 64], sizes = [2, 32], strides = [1, 1]} : vector<2x128xf32> to vector<2x32xf32>
    %30 = math.tanh %29 : vector<2x32xf32>
    %31 = arith.mulf %27, %14 : vector<2x32xf32>
    %32 = arith.mulf %26, %30 : vector<2x32xf32>
    %33 = arith.addf %31, %32 : vector<2x32xf32>
    %34 = math.tanh %33 : vector<2x32xf32>
    %35 = arith.mulf %28, %34 : vector<2x32xf32>
    %36 = arith.index_cast %15 : i32 to index
    %c0_18 = arith.constant 0 : index
    %37 = vector.load %arg15[%36, %c0_18] : memref<16x32xf32, #tpu.memory_space<vmem>>, vector<2x32xf32>
    tpu.vector_store %arg15[%36, %c0_18], %35 {strides = array<i32>} : memref<16x32xf32, #tpu.memory_space<vmem>>, vector<2x32xf32>,
    %c1_i32 = arith.constant 1 : i32
    %c2_i32_19 = arith.constant 2 : i32
    %38 = arith.muli %c1_i32, %c2_i32_19 : i32
    %39 = arith.index_cast %38 : i32 to index
    %c0_20 = arith.constant 0 : index
    %40 = vector.load %arg14[%39, %c0_20] : memref<16x128xf32, #tpu.memory_space<vmem>>, vector<2x128xf32>
    %41 = arith.truncf %35 : vector<2x32xf32> to vector<2x32xbf16>
    %cst_21 = arith.constant dense<0.000000e+00> : vector<2x128xf32>
    %42 = tpu.matmul %41, %3, %cst_21 {dimension_numbers = #tpu.dot_dimension_numbers<[1], [0], [0], [1], [0, 0, 1, 1], [], []>} : vector<2x32xbf16>, vector<32x128xbf16>, vector<2x128xf32> -> vector<2x128xf32>
    %43 = arith.addf %40, %42 : vector<2x128xf32>
    %44 = arith.negf %43 : vector<2x128xf32>
    %45 = math.exp %44 : vector<2x128xf32>
    %cst_22 = arith.constant 1.000000e+00 : f32
    %46 = vector.broadcast %cst_22 : f32 to vector<2x128xf32>
    %47 = arith.addf %46, %45 : vector<2x128xf32>
    %48 = arith.divf %46, %47 : vector<2x128xf32>
    %49 = vector.extract_strided_slice %48 {offsets = [0, 0], sizes = [2, 32], strides = [1, 1]} : vector<2x128xf32> to vector<2x32xf32>
    %50 = vector.extract_strided_slice %48 {offsets = [0, 32], sizes = [2, 32], strides = [1, 1]} : vector<2x128xf32> to vector<2x32xf32>
    %51 = vector.extract_strided_slice %48 {offsets = [0, 96], sizes = [2, 32], strides = [1, 1]} : vector<2x128xf32> to vector<2x32xf32>
    %52 = vector.extract_strided_slice %43 {offsets = [0, 64], sizes = [2, 32], strides = [1, 1]} : vector<2x128xf32> to vector<2x32xf32>
    %53 = math.tanh %52 : vector<2x32xf32>
    %54 = arith.mulf %50, %33 : vector<2x32xf32>
    %55 = arith.mulf %49, %53 : vector<2x32xf32>
    %56 = arith.addf %54, %55 : vector<2x32xf32>
    %57 = math.tanh %56 : vector<2x32xf32>
    %58 = arith.mulf %51, %57 : vector<2x32xf32>
    %59 = arith.index_cast %38 : i32 to index
    %c0_23 = arith.constant 0 : index
    %60 = vector.load %arg15[%59, %c0_23] : memref<16x32xf32, #tpu.memory_space<vmem>>, vector<2x32xf32>
    tpu.vector_store %arg15[%59, %c0_23], %58 {strides = array<i32>} : memref<16x32xf32, #tpu.memory_space<vmem>>, vector<2x32xf32>,
    %c2_i32_24 = arith.constant 2 : i32
    %c2_i32_25 = arith.constant 2 : i32
    %61 = arith.muli %c2_i32_24, %c2_i32_25 : i32
    %62 = arith.index_cast %61 : i32 to index
    %c0_26 = arith.constant 0 : index
    %63 = vector.load %arg14[%62, %c0_26] : memref<16x128xf32, #tpu.memory_space<vmem>>, vector<2x128xf32>
    %64 = arith.truncf %58 : vector<2x32xf32> to vector<2x32xbf16>
    %cst_27 = arith.constant dense<0.000000e+00> : vector<2x128xf32>
    %65 = tpu.matmul %64, %3, %cst_27 {dimension_numbers = #tpu.dot_dimension_numbers<[1], [0], [0], [1], [0, 0, 1, 1], [], []>} : vector<2x32xbf16>, vector<32x128xbf16>, vector<2x128xf32> -> vector<2x128xf32>
    %66 = arith.addf %63, %65 : vector<2x128xf32>
    %67 = arith.negf %66 : vector<2x128xf32>
    %68 = math.exp %67 : vector<2x128xf32>
    %cst_28 = arith.constant 1.000000e+00 : f32
    %69 = vector.broadcast %cst_28 : f32 to vector<2x128xf32>
    %70 = arith.addf %69, %68 : vector<2x128xf32>
    %71 = arith.divf %69, %70 : vector<2x128xf32>
    %72 = vector.extract_strided_slice %71 {offsets = [0, 0], sizes = [2, 32], strides = [1, 1]} : vector<2x128xf32> to vector<2x32xf32>
    %73 = vector.extract_strided_slice %71 {offsets = [0, 32], sizes = [2, 32], strides = [1, 1]} : vector<2x128xf32> to vector<2x32xf32>
    %74 = vector.extract_strided_slice %71 {offsets = [0, 96], sizes = [2, 32], strides = [1, 1]} : vector<2x128xf32> to vector<2x32xf32>
    %75 = vector.extract_strided_slice %66 {offsets = [0, 64], sizes = [2, 32], strides = [1, 1]} : vector<2x128xf32> to vector<2x32xf32>
    %76 = math.tanh %75 : vector<2x32xf32>
    %77 = arith.mulf %73, %56 : vector<2x32xf32>
    %78 = arith.mulf %72, %76 : vector<2x32xf32>
    %79 = arith.addf %77, %78 : vector<2x32xf32>
    %80 = math.tanh %79 : vector<2x32xf32>
    %81 = arith.mulf %74, %80 : vector<2x32xf32>
    %82 = arith.index_cast %61 : i32 to index
    %c0_29 = arith.constant 0 : index
    %83 = vector.load %arg15[%82, %c0_29] : memref<16x32xf32, #tpu.memory_space<vmem>>, vector<2x32xf32>
    tpu.vector_store %arg15[%82, %c0_29], %81 {strides = array<i32>} : memref<16x32xf32, #tpu.memory_space<vmem>>, vector<2x32xf32>,
    %c3_i32 = arith.constant 3 : i32
    %c2_i32_30 = arith.constant 2 : i32
    %84 = arith.muli %c3_i32, %c2_i32_30 : i32
    %85 = arith.index_cast %84 : i32 to index
    %c0_31 = arith.constant 0 : index
    %86 = vector.load %arg14[%85, %c0_31] : memref<16x128xf32, #tpu.memory_space<vmem>>, vector<2x128xf32>
    %87 = arith.truncf %81 : vector<2x32xf32> to vector<2x32xbf16>
    %cst_32 = arith.constant dense<0.000000e+00> : vector<2x128xf32>
    %88 = tpu.matmul %87, %3, %cst_32 {dimension_numbers = #tpu.dot_dimension_numbers<[1], [0], [0], [1], [0, 0, 1, 1], [], []>} : vector<2x32xbf16>, vector<32x128xbf16>, vector<2x128xf32> -> vector<2x128xf32>
    %89 = arith.addf %86, %88 : vector<2x128xf32>
    %90 = arith.negf %89 : vector<2x128xf32>
    %91 = math.exp %90 : vector<2x128xf32>
    %cst_33 = arith.constant 1.000000e+00 : f32
    %92 = vector.broadcast %cst_33 : f32 to vector<2x128xf32>
    %93 = arith.addf %92, %91 : vector<2x128xf32>
    %94 = arith.divf %92, %93 : vector<2x128xf32>
    %95 = vector.extract_strided_slice %94 {offsets = [0, 0], sizes = [2, 32], strides = [1, 1]} : vector<2x128xf32> to vector<2x32xf32>
    %96 = vector.extract_strided_slice %94 {offsets = [0, 32], sizes = [2, 32], strides = [1, 1]} : vector<2x128xf32> to vector<2x32xf32>
    %97 = vector.extract_strided_slice %94 {offsets = [0, 96], sizes = [2, 32], strides = [1, 1]} : vector<2x128xf32> to vector<2x32xf32>
    %98 = vector.extract_strided_slice %89 {offsets = [0, 64], sizes = [2, 32], strides = [1, 1]} : vector<2x128xf32> to vector<2x32xf32>
    %99 = math.tanh %98 : vector<2x32xf32>
    %100 = arith.mulf %96, %79 : vector<2x32xf32>
    %101 = arith.mulf %95, %99 : vector<2x32xf32>
    %102 = arith.addf %100, %101 : vector<2x32xf32>
    %103 = math.tanh %102 : vector<2x32xf32>
    %104 = arith.mulf %97, %103 : vector<2x32xf32>
    %105 = arith.index_cast %84 : i32 to index
    %c0_34 = arith.constant 0 : index
    %106 = vector.load %arg15[%105, %c0_34] : memref<16x32xf32, #tpu.memory_space<vmem>>, vector<2x32xf32>
    tpu.vector_store %arg15[%105, %c0_34], %104 {strides = array<i32>} : memref<16x32xf32, #tpu.memory_space<vmem>>, vector<2x32xf32>,
    %c4_i32 = arith.constant 4 : i32
    %c2_i32_35 = arith.constant 2 : i32
    %107 = arith.muli %c4_i32, %c2_i32_35 : i32
    %108 = arith.index_cast %107 : i32 to index
    %c0_36 = arith.constant 0 : index
    %109 = vector.load %arg14[%108, %c0_36] : memref<16x128xf32, #tpu.memory_space<vmem>>, vector<2x128xf32>
    %110 = arith.truncf %104 : vector<2x32xf32> to vector<2x32xbf16>
    %cst_37 = arith.constant dense<0.000000e+00> : vector<2x128xf32>
    %111 = tpu.matmul %110, %3, %cst_37 {dimension_numbers = #tpu.dot_dimension_numbers<[1], [0], [0], [1], [0, 0, 1, 1], [], []>} : vector<2x32xbf16>, vector<32x128xbf16>, vector<2x128xf32> -> vector<2x128xf32>
    %112 = arith.addf %109, %111 : vector<2x128xf32>
    %113 = arith.negf %112 : vector<2x128xf32>
    %114 = math.exp %113 : vector<2x128xf32>
    %cst_38 = arith.constant 1.000000e+00 : f32
    %115 = vector.broadcast %cst_38 : f32 to vector<2x128xf32>
    %116 = arith.addf %115, %114 : vector<2x128xf32>
    %117 = arith.divf %115, %116 : vector<2x128xf32>
    %118 = vector.extract_strided_slice %117 {offsets = [0, 0], sizes = [2, 32], strides = [1, 1]} : vector<2x128xf32> to vector<2x32xf32>
    %119 = vector.extract_strided_slice %117 {offsets = [0, 32], sizes = [2, 32], strides = [1, 1]} : vector<2x128xf32> to vector<2x32xf32>
    %120 = vector.extract_strided_slice %117 {offsets = [0, 96], sizes = [2, 32], strides = [1, 1]} : vector<2x128xf32> to vector<2x32xf32>
    %121 = vector.extract_strided_slice %112 {offsets = [0, 64], sizes = [2, 32], strides = [1, 1]} : vector<2x128xf32> to vector<2x32xf32>
    %122 = math.tanh %121 : vector<2x32xf32>
    %123 = arith.mulf %119, %102 : vector<2x32xf32>
    %124 = arith.mulf %118, %122 : vector<2x32xf32>
    %125 = arith.addf %123, %124 : vector<2x32xf32>
    %126 = math.tanh %125 : vector<2x32xf32>
    %127 = arith.mulf %120, %126 : vector<2x32xf32>
    %128 = arith.index_cast %107 : i32 to index
    %c0_39 = arith.constant 0 : index
    %129 = vector.load %arg15[%128, %c0_39] : memref<16x32xf32, #tpu.memory_space<vmem>>, vector<2x32xf32>
    tpu.vector_store %arg15[%128, %c0_39], %127 {strides = array<i32>} : memref<16x32xf32, #tpu.memory_space<vmem>>, vector<2x32xf32>,
    %c5_i32 = arith.constant 5 : i32
    %c2_i32_40 = arith.constant 2 : i32
    %130 = arith.muli %c5_i32, %c2_i32_40 : i32
    %131 = arith.index_cast %130 : i32 to index
    %c0_41 = arith.constant 0 : index
    %132 = vector.load %arg14[%131, %c0_41] : memref<16x128xf32, #tpu.memory_space<vmem>>, vector<2x128xf32>
    %133 = arith.truncf %127 : vector<2x32xf32> to vector<2x32xbf16>
    %cst_42 = arith.constant dense<0.000000e+00> : vector<2x128xf32>
    %134 = tpu.matmul %133, %3, %cst_42 {dimension_numbers = #tpu.dot_dimension_numbers<[1], [0], [0], [1], [0, 0, 1, 1], [], []>} : vector<2x32xbf16>, vector<32x128xbf16>, vector<2x128xf32> -> vector<2x128xf32>
    %135 = arith.addf %132, %134 : vector<2x128xf32>
    %136 = arith.negf %135 : vector<2x128xf32>
    %137 = math.exp %136 : vector<2x128xf32>
    %cst_43 = arith.constant 1.000000e+00 : f32
    %138 = vector.broadcast %cst_43 : f32 to vector<2x128xf32>
    %139 = arith.addf %138, %137 : vector<2x128xf32>
    %140 = arith.divf %138, %139 : vector<2x128xf32>
    %141 = vector.extract_strided_slice %140 {offsets = [0, 0], sizes = [2, 32], strides = [1, 1]} : vector<2x128xf32> to vector<2x32xf32>
    %142 = vector.extract_strided_slice %140 {offsets = [0, 32], sizes = [2, 32], strides = [1, 1]} : vector<2x128xf32> to vector<2x32xf32>
    %143 = vector.extract_strided_slice %140 {offsets = [0, 96], sizes = [2, 32], strides = [1, 1]} : vector<2x128xf32> to vector<2x32xf32>
    %144 = vector.extract_strided_slice %135 {offsets = [0, 64], sizes = [2, 32], strides = [1, 1]} : vector<2x128xf32> to vector<2x32xf32>
    %145 = math.tanh %144 : vector<2x32xf32>
    %146 = arith.mulf %142, %125 : vector<2x32xf32>
    %147 = arith.mulf %141, %145 : vector<2x32xf32>
    %148 = arith.addf %146, %147 : vector<2x32xf32>
    %149 = math.tanh %148 : vector<2x32xf32>
    %150 = arith.mulf %143, %149 : vector<2x32xf32>
    %151 = arith.index_cast %130 : i32 to index
    %c0_44 = arith.constant 0 : index
    %152 = vector.load %arg15[%151, %c0_44] : memref<16x32xf32, #tpu.memory_space<vmem>>, vector<2x32xf32>
    tpu.vector_store %arg15[%151, %c0_44], %150 {strides = array<i32>} : memref<16x32xf32, #tpu.memory_space<vmem>>, vector<2x32xf32>,
    %c6_i32 = arith.constant 6 : i32
    %c2_i32_45 = arith.constant 2 : i32
    %153 = arith.muli %c6_i32, %c2_i32_45 : i32
    %154 = arith.index_cast %153 : i32 to index
    %c0_46 = arith.constant 0 : index
    %155 = vector.load %arg14[%154, %c0_46] : memref<16x128xf32, #tpu.memory_space<vmem>>, vector<2x128xf32>
    %156 = arith.truncf %150 : vector<2x32xf32> to vector<2x32xbf16>
    %cst_47 = arith.constant dense<0.000000e+00> : vector<2x128xf32>
    %157 = tpu.matmul %156, %3, %cst_47 {dimension_numbers = #tpu.dot_dimension_numbers<[1], [0], [0], [1], [0, 0, 1, 1], [], []>} : vector<2x32xbf16>, vector<32x128xbf16>, vector<2x128xf32> -> vector<2x128xf32>
    %158 = arith.addf %155, %157 : vector<2x128xf32>
    %159 = arith.negf %158 : vector<2x128xf32>
    %160 = math.exp %159 : vector<2x128xf32>
    %cst_48 = arith.constant 1.000000e+00 : f32
    %161 = vector.broadcast %cst_48 : f32 to vector<2x128xf32>
    %162 = arith.addf %161, %160 : vector<2x128xf32>
    %163 = arith.divf %161, %162 : vector<2x128xf32>
    %164 = vector.extract_strided_slice %163 {offsets = [0, 0], sizes = [2, 32], strides = [1, 1]} : vector<2x128xf32> to vector<2x32xf32>
    %165 = vector.extract_strided_slice %163 {offsets = [0, 32], sizes = [2, 32], strides = [1, 1]} : vector<2x128xf32> to vector<2x32xf32>
    %166 = vector.extract_strided_slice %163 {offsets = [0, 96], sizes = [2, 32], strides = [1, 1]} : vector<2x128xf32> to vector<2x32xf32>
    %167 = vector.extract_strided_slice %158 {offsets = [0, 64], sizes = [2, 32], strides = [1, 1]} : vector<2x128xf32> to vector<2x32xf32>
    %168 = math.tanh %167 : vector<2x32xf32>
    %169 = arith.mulf %165, %148 : vector<2x32xf32>
    %170 = arith.mulf %164, %168 : vector<2x32xf32>
    %171 = arith.addf %169, %170 : vector<2x32xf32>
    %172 = math.tanh %171 : vector<2x32xf32>
    %173 = arith.mulf %166, %172 : vector<2x32xf32>
    %174 = arith.index_cast %153 : i32 to index
    %c0_49 = arith.constant 0 : index
    %175 = vector.load %arg15[%174, %c0_49] : memref<16x32xf32, #tpu.memory_space<vmem>>, vector<2x32xf32>
    tpu.vector_store %arg15[%174, %c0_49], %173 {strides = array<i32>} : memref<16x32xf32, #tpu.memory_space<vmem>>, vector<2x32xf32>,
    %c7_i32 = arith.constant 7 : i32
    %c2_i32_50 = arith.constant 2 : i32
    %176 = arith.muli %c7_i32, %c2_i32_50 : i32
    %177 = arith.index_cast %176 : i32 to index
    %c0_51 = arith.constant 0 : index
    %178 = vector.load %arg14[%177, %c0_51] : memref<16x128xf32, #tpu.memory_space<vmem>>, vector<2x128xf32>
    %179 = arith.truncf %173 : vector<2x32xf32> to vector<2x32xbf16>
    %cst_52 = arith.constant dense<0.000000e+00> : vector<2x128xf32>
    %180 = tpu.matmul %179, %3, %cst_52 {dimension_numbers = #tpu.dot_dimension_numbers<[1], [0], [0], [1], [0, 0, 1, 1], [], []>} : vector<2x32xbf16>, vector<32x128xbf16>, vector<2x128xf32> -> vector<2x128xf32>
    %181 = arith.addf %178, %180 : vector<2x128xf32>
    %182 = arith.negf %181 : vector<2x128xf32>
    %183 = math.exp %182 : vector<2x128xf32>
    %cst_53 = arith.constant 1.000000e+00 : f32
    %184 = vector.broadcast %cst_53 : f32 to vector<2x128xf32>
    %185 = arith.addf %184, %183 : vector<2x128xf32>
    %186 = arith.divf %184, %185 : vector<2x128xf32>
    %187 = vector.extract_strided_slice %186 {offsets = [0, 0], sizes = [2, 32], strides = [1, 1]} : vector<2x128xf32> to vector<2x32xf32>
    %188 = vector.extract_strided_slice %186 {offsets = [0, 32], sizes = [2, 32], strides = [1, 1]} : vector<2x128xf32> to vector<2x32xf32>
    %189 = vector.extract_strided_slice %186 {offsets = [0, 96], sizes = [2, 32], strides = [1, 1]} : vector<2x128xf32> to vector<2x32xf32>
    %190 = vector.extract_strided_slice %181 {offsets = [0, 64], sizes = [2, 32], strides = [1, 1]} : vector<2x128xf32> to vector<2x32xf32>
    %191 = math.tanh %190 : vector<2x32xf32>
    %192 = arith.mulf %188, %171 : vector<2x32xf32>
    %193 = arith.mulf %187, %191 : vector<2x32xf32>
    %194 = arith.addf %192, %193 : vector<2x32xf32>
    %195 = math.tanh %194 : vector<2x32xf32>
    %196 = arith.mulf %189, %195 : vector<2x32xf32>
    %197 = arith.index_cast %176 : i32 to index
    %c0_54 = arith.constant 0 : index
    %198 = vector.load %arg15[%197, %c0_54] : memref<16x32xf32, #tpu.memory_space<vmem>>, vector<2x32xf32>
    tpu.vector_store %arg15[%197, %c0_54], %196 {strides = array<i32>} : memref<16x32xf32, #tpu.memory_space<vmem>>, vector<2x32xf32>,
    %c8_i32 = arith.constant 8 : i32
    %c0_55 = arith.constant 0 : index
    %c0_56 = arith.constant 0 : index
    %c0_57 = arith.constant 0 : index
    %199 = vector.load %arg12[%c0_55, %c0_56, %c0_57] : memref<2x2x32xf32, #tpu.memory_space<vmem>>, vector<1x2x32xf32>
    %200 = vector.shape_cast %199 : vector<1x2x32xf32> to vector<2x32xf32>
    %201 = vector.shape_cast %196 : vector<2x32xf32> to vector<1x2x32xf32>
    tpu.vector_store %arg12[%c0_55, %c0_56, %c0_57], %201 {strides = array<i32>} : memref<2x2x32xf32, #tpu.memory_space<vmem>>, vector<1x2x32xf32>,
    %c0_58 = arith.constant 0 : index
    %c0_59 = arith.constant 0 : index
    %c0_60 = arith.constant 0 : index
    %202 = vector.load %arg13[%c0_58, %c0_59, %c0_60] : memref<2x2x32xf32, #tpu.memory_space<vmem>>, vector<1x2x32xf32>
    %203 = vector.shape_cast %202 : vector<1x2x32xf32> to vector<2x32xf32>
    %204 = vector.shape_cast %194 : vector<2x32xf32> to vector<1x2x32xf32>
    tpu.vector_store %arg13[%c0_58, %c0_59, %c0_60], %204 {strides = array<i32>} : memref<2x2x32xf32, #tpu.memory_space<vmem>>, vector<1x2x32xf32>,
    %c0_61 = arith.constant 0 : index
    %c0_62 = arith.constant 0 : index
    %205 = vector.load %arg8[%c0_61, %c0_62] : memref<32x128xf32, #tpu.memory_space<vmem>>, vector<32x128xf32>
    %206 = arith.truncf %205 : vector<32x128xf32> to vector<32x128xbf16>
    %c0_63 = arith.constant 0 : index
    %c0_64 = arith.constant 0 : index
    %207 = vector.load %arg9[%c0_63, %c0_64] : memref<32x128xf32, #tpu.memory_space<vmem>>, vector<32x128xf32>
    %208 = arith.truncf %207 : vector<32x128xf32> to vector<32x128xbf16>
    %c0_65 = arith.constant 0 : index
    %c0_66 = arith.constant 0 : index
    %209 = vector.load %arg10[%c0_65, %c0_66] : memref<1x128xf32, #tpu.memory_space<vmem>>, vector<1x128xf32>
    %c0_67 = arith.constant 0 : index
    %c0_68 = arith.constant 0 : index
    %210 = vector.load %arg15[%c0_67, %c0_68] : memref<16x32xf32, #tpu.memory_space<vmem>>, vector<16x32xf32>
    %211 = arith.truncf %210 : vector<16x32xf32> to vector<16x32xbf16>
    %cst_69 = arith.constant dense<0.000000e+00> : vector<16x128xf32>
    %212 = tpu.matmul %211, %206, %cst_69 {dimension_numbers = #tpu.dot_dimension_numbers<[1], [0], [0], [1], [0, 0, 1, 1], [], []>} : vector<16x32xbf16>, vector<32x128xbf16>, vector<16x128xf32> -> vector<16x128xf32>
    %213 = vector.broadcast %209 : vector<1x128xf32> to vector<16x128xf32>
    %214 = arith.addf %212, %213 : vector<16x128xf32>
    %c0_70 = arith.constant 0 : index
    %c0_71 = arith.constant 0 : index
    %215 = vector.load %arg14[%c0_70, %c0_71] : memref<16x128xf32, #tpu.memory_space<vmem>>, vector<16x128xf32>
    tpu.vector_store %arg14[%c0_70, %c0_71], %214 {strides = array<i32>} : memref<16x128xf32, #tpu.memory_space<vmem>>, vector<16x128xf32>,
    %c1 = arith.constant 1 : index
    %c0_72 = arith.constant 0 : index
    %c0_73 = arith.constant 0 : index
    %216 = vector.load %arg1[%c1, %c0_72, %c0_73] : memref<2x2x32xf32, #tpu.memory_space<vmem>>, vector<1x2x32xf32>
    %217 = vector.shape_cast %216 : vector<1x2x32xf32> to vector<2x32xf32>
    %c1_74 = arith.constant 1 : index
    %c0_75 = arith.constant 0 : index
    %c0_76 = arith.constant 0 : index
    %218 = vector.load %arg2[%c1_74, %c0_75, %c0_76] : memref<2x2x32xf32, #tpu.memory_space<vmem>>, vector<1x2x32xf32>
    %219 = vector.shape_cast %218 : vector<1x2x32xf32> to vector<2x32xf32>
    %c0_i32_77 = arith.constant 0 : i32
    %c2_i32_78 = arith.constant 2 : i32
    %220 = arith.muli %c0_i32_77, %c2_i32_78 : i32
    %221 = arith.index_cast %220 : i32 to index
    %c0_79 = arith.constant 0 : index
    %222 = vector.load %arg14[%221, %c0_79] : memref<16x128xf32, #tpu.memory_space<vmem>>, vector<2x128xf32>
    %223 = arith.truncf %217 : vector<2x32xf32> to vector<2x32xbf16>
    %cst_80 = arith.constant dense<0.000000e+00> : vector<2x128xf32>
    %224 = tpu.matmul %223, %208, %cst_80 {dimension_numbers = #tpu.dot_dimension_numbers<[1], [0], [0], [1], [0, 0, 1, 1], [], []>} : vector<2x32xbf16>, vector<32x128xbf16>, vector<2x128xf32> -> vector<2x128xf32>
    %225 = arith.addf %222, %224 : vector<2x128xf32>
    %226 = arith.negf %225 : vector<2x128xf32>
    %227 = math.exp %226 : vector<2x128xf32>
    %cst_81 = arith.constant 1.000000e+00 : f32
    %228 = vector.broadcast %cst_81 : f32 to vector<2x128xf32>
    %229 = arith.addf %228, %227 : vector<2x128xf32>
    %230 = arith.divf %228, %229 : vector<2x128xf32>
    %231 = vector.extract_strided_slice %230 {offsets = [0, 0], sizes = [2, 32], strides = [1, 1]} : vector<2x128xf32> to vector<2x32xf32>
    %232 = vector.extract_strided_slice %230 {offsets = [0, 32], sizes = [2, 32], strides = [1, 1]} : vector<2x128xf32> to vector<2x32xf32>
    %233 = vector.extract_strided_slice %230 {offsets = [0, 96], sizes = [2, 32], strides = [1, 1]} : vector<2x128xf32> to vector<2x32xf32>
    %234 = vector.extract_strided_slice %225 {offsets = [0, 64], sizes = [2, 32], strides = [1, 1]} : vector<2x128xf32> to vector<2x32xf32>
    %235 = math.tanh %234 : vector<2x32xf32>
    %236 = arith.mulf %232, %219 : vector<2x32xf32>
    %237 = arith.mulf %231, %235 : vector<2x32xf32>
    %238 = arith.addf %236, %237 : vector<2x32xf32>
    %239 = math.tanh %238 : vector<2x32xf32>
    %240 = arith.mulf %233, %239 : vector<2x32xf32>
    %c1_i32_82 = arith.constant 1 : i32
    %c2_i32_83 = arith.constant 2 : i32
    %241 = arith.muli %c1_i32_82, %c2_i32_83 : i32
    %242 = arith.index_cast %241 : i32 to index
    %c0_84 = arith.constant 0 : index
    %243 = vector.load %arg14[%242, %c0_84] : memref<16x128xf32, #tpu.memory_space<vmem>>, vector<2x128xf32>
    %244 = arith.truncf %240 : vector<2x32xf32> to vector<2x32xbf16>
    %cst_85 = arith.constant dense<0.000000e+00> : vector<2x128xf32>
    %245 = tpu.matmul %244, %208, %cst_85 {dimension_numbers = #tpu.dot_dimension_numbers<[1], [0], [0], [1], [0, 0, 1, 1], [], []>} : vector<2x32xbf16>, vector<32x128xbf16>, vector<2x128xf32> -> vector<2x128xf32>
    %246 = arith.addf %243, %245 : vector<2x128xf32>
    %247 = arith.negf %246 : vector<2x128xf32>
    %248 = math.exp %247 : vector<2x128xf32>
    %cst_86 = arith.constant 1.000000e+00 : f32
    %249 = vector.broadcast %cst_86 : f32 to vector<2x128xf32>
    %250 = arith.addf %249, %248 : vector<2x128xf32>
    %251 = arith.divf %249, %250 : vector<2x128xf32>
    %252 = vector.extract_strided_slice %251 {offsets = [0, 0], sizes = [2, 32], strides = [1, 1]} : vector<2x128xf32> to vector<2x32xf32>
    %253 = vector.extract_strided_slice %251 {offsets = [0, 32], sizes = [2, 32], strides = [1, 1]} : vector<2x128xf32> to vector<2x32xf32>
    %254 = vector.extract_strided_slice %251 {offsets = [0, 96], sizes = [2, 32], strides = [1, 1]} : vector<2x128xf32> to vector<2x32xf32>
    %255 = vector.extract_strided_slice %246 {offsets = [0, 64], sizes = [2, 32], strides = [1, 1]} : vector<2x128xf32> to vector<2x32xf32>
    %256 = math.tanh %255 : vector<2x32xf32>
    %257 = arith.mulf %253, %238 : vector<2x32xf32>
    %258 = arith.mulf %252, %256 : vector<2x32xf32>
    %259 = arith.addf %257, %258 : vector<2x32xf32>
    %260 = math.tanh %259 : vector<2x32xf32>
    %261 = arith.mulf %254, %260 : vector<2x32xf32>
    %c2_i32_87 = arith.constant 2 : i32
    %c2_i32_88 = arith.constant 2 : i32
    %262 = arith.muli %c2_i32_87, %c2_i32_88 : i32
    %263 = arith.index_cast %262 : i32 to index
    %c0_89 = arith.constant 0 : index
    %264 = vector.load %arg14[%263, %c0_89] : memref<16x128xf32, #tpu.memory_space<vmem>>, vector<2x128xf32>
    %265 = arith.truncf %261 : vector<2x32xf32> to vector<2x32xbf16>
    %cst_90 = arith.constant dense<0.000000e+00> : vector<2x128xf32>
    %266 = tpu.matmul %265, %208, %cst_90 {dimension_numbers = #tpu.dot_dimension_numbers<[1], [0], [0], [1], [0, 0, 1, 1], [], []>} : vector<2x32xbf16>, vector<32x128xbf16>, vector<2x128xf32> -> vector<2x128xf32>
    %267 = arith.addf %264, %266 : vector<2x128xf32>
    %268 = arith.negf %267 : vector<2x128xf32>
    %269 = math.exp %268 : vector<2x128xf32>
    %cst_91 = arith.constant 1.000000e+00 : f32
    %270 = vector.broadcast %cst_91 : f32 to vector<2x128xf32>
    %271 = arith.addf %270, %269 : vector<2x128xf32>
    %272 = arith.divf %270, %271 : vector<2x128xf32>
    %273 = vector.extract_strided_slice %272 {offsets = [0, 0], sizes = [2, 32], strides = [1, 1]} : vector<2x128xf32> to vector<2x32xf32>
    %274 = vector.extract_strided_slice %272 {offsets = [0, 32], sizes = [2, 32], strides = [1, 1]} : vector<2x128xf32> to vector<2x32xf32>
    %275 = vector.extract_strided_slice %272 {offsets = [0, 96], sizes = [2, 32], strides = [1, 1]} : vector<2x128xf32> to vector<2x32xf32>
    %276 = vector.extract_strided_slice %267 {offsets = [0, 64], sizes = [2, 32], strides = [1, 1]} : vector<2x128xf32> to vector<2x32xf32>
    %277 = math.tanh %276 : vector<2x32xf32>
    %278 = arith.mulf %274, %259 : vector<2x32xf32>
    %279 = arith.mulf %273, %277 : vector<2x32xf32>
    %280 = arith.addf %278, %279 : vector<2x32xf32>
    %281 = math.tanh %280 : vector<2x32xf32>
    %282 = arith.mulf %275, %281 : vector<2x32xf32>
    %c3_i32_92 = arith.constant 3 : i32
    %c2_i32_93 = arith.constant 2 : i32
    %283 = arith.muli %c3_i32_92, %c2_i32_93 : i32
    %284 = arith.index_cast %283 : i32 to index
    %c0_94 = arith.constant 0 : index
    %285 = vector.load %arg14[%284, %c0_94] : memref<16x128xf32, #tpu.memory_space<vmem>>, vector<2x128xf32>
    %286 = arith.truncf %282 : vector<2x32xf32> to vector<2x32xbf16>
    %cst_95 = arith.constant dense<0.000000e+00> : vector<2x128xf32>
    %287 = tpu.matmul %286, %208, %cst_95 {dimension_numbers = #tpu.dot_dimension_numbers<[1], [0], [0], [1], [0, 0, 1, 1], [], []>} : vector<2x32xbf16>, vector<32x128xbf16>, vector<2x128xf32> -> vector<2x128xf32>
    %288 = arith.addf %285, %287 : vector<2x128xf32>
    %289 = arith.negf %288 : vector<2x128xf32>
    %290 = math.exp %289 : vector<2x128xf32>
    %cst_96 = arith.constant 1.000000e+00 : f32
    %291 = vector.broadcast %cst_96 : f32 to vector<2x128xf32>
    %292 = arith.addf %291, %290 : vector<2x128xf32>
    %293 = arith.divf %291, %292 : vector<2x128xf32>
    %294 = vector.extract_strided_slice %293 {offsets = [0, 0], sizes = [2, 32], strides = [1, 1]} : vector<2x128xf32> to vector<2x32xf32>
    %295 = vector.extract_strided_slice %293 {offsets = [0, 32], sizes = [2, 32], strides = [1, 1]} : vector<2x128xf32> to vector<2x32xf32>
    %296 = vector.extract_strided_slice %293 {offsets = [0, 96], sizes = [2, 32], strides = [1, 1]} : vector<2x128xf32> to vector<2x32xf32>
    %297 = vector.extract_strided_slice %288 {offsets = [0, 64], sizes = [2, 32], strides = [1, 1]} : vector<2x128xf32> to vector<2x32xf32>
    %298 = math.tanh %297 : vector<2x32xf32>
    %299 = arith.mulf %295, %280 : vector<2x32xf32>
    %300 = arith.mulf %294, %298 : vector<2x32xf32>
    %301 = arith.addf %299, %300 : vector<2x32xf32>
    %302 = math.tanh %301 : vector<2x32xf32>
    %303 = arith.mulf %296, %302 : vector<2x32xf32>
    %c4_i32_97 = arith.constant 4 : i32
    %c2_i32_98 = arith.constant 2 : i32
    %304 = arith.muli %c4_i32_97, %c2_i32_98 : i32
    %305 = arith.index_cast %304 : i32 to index
    %c0_99 = arith.constant 0 : index
    %306 = vector.load %arg14[%305, %c0_99] : memref<16x128xf32, #tpu.memory_space<vmem>>, vector<2x128xf32>
    %307 = arith.truncf %303 : vector<2x32xf32> to vector<2x32xbf16>
    %cst_100 = arith.constant dense<0.000000e+00> : vector<2x128xf32>
    %308 = tpu.matmul %307, %208, %cst_100 {dimension_numbers = #tpu.dot_dimension_numbers<[1], [0], [0], [1], [0, 0, 1, 1], [], []>} : vector<2x32xbf16>, vector<32x128xbf16>, vector<2x128xf32> -> vector<2x128xf32>
    %309 = arith.addf %306, %308 : vector<2x128xf32>
    %310 = arith.negf %309 : vector<2x128xf32>
    %311 = math.exp %310 : vector<2x128xf32>
    %cst_101 = arith.constant 1.000000e+00 : f32
    %312 = vector.broadcast %cst_101 : f32 to vector<2x128xf32>
    %313 = arith.addf %312, %311 : vector<2x128xf32>
    %314 = arith.divf %312, %313 : vector<2x128xf32>
    %315 = vector.extract_strided_slice %314 {offsets = [0, 0], sizes = [2, 32], strides = [1, 1]} : vector<2x128xf32> to vector<2x32xf32>
    %316 = vector.extract_strided_slice %314 {offsets = [0, 32], sizes = [2, 32], strides = [1, 1]} : vector<2x128xf32> to vector<2x32xf32>
    %317 = vector.extract_strided_slice %314 {offsets = [0, 96], sizes = [2, 32], strides = [1, 1]} : vector<2x128xf32> to vector<2x32xf32>
    %318 = vector.extract_strided_slice %309 {offsets = [0, 64], sizes = [2, 32], strides = [1, 1]} : vector<2x128xf32> to vector<2x32xf32>
    %319 = math.tanh %318 : vector<2x32xf32>
    %320 = arith.mulf %316, %301 : vector<2x32xf32>
    %321 = arith.mulf %315, %319 : vector<2x32xf32>
    %322 = arith.addf %320, %321 : vector<2x32xf32>
    %323 = math.tanh %322 : vector<2x32xf32>
    %324 = arith.mulf %317, %323 : vector<2x32xf32>
    %c5_i32_102 = arith.constant 5 : i32
    %c2_i32_103 = arith.constant 2 : i32
    %325 = arith.muli %c5_i32_102, %c2_i32_103 : i32
    %326 = arith.index_cast %325 : i32 to index
    %c0_104 = arith.constant 0 : index
    %327 = vector.load %arg14[%326, %c0_104] : memref<16x128xf32, #tpu.memory_space<vmem>>, vector<2x128xf32>
    %328 = arith.truncf %324 : vector<2x32xf32> to vector<2x32xbf16>
    %cst_105 = arith.constant dense<0.000000e+00> : vector<2x128xf32>
    %329 = tpu.matmul %328, %208, %cst_105 {dimension_numbers = #tpu.dot_dimension_numbers<[1], [0], [0], [1], [0, 0, 1, 1], [], []>} : vector<2x32xbf16>, vector<32x128xbf16>, vector<2x128xf32> -> vector<2x128xf32>
    %330 = arith.addf %327, %329 : vector<2x128xf32>
    %331 = arith.negf %330 : vector<2x128xf32>
    %332 = math.exp %331 : vector<2x128xf32>
    %cst_106 = arith.constant 1.000000e+00 : f32
    %333 = vector.broadcast %cst_106 : f32 to vector<2x128xf32>
    %334 = arith.addf %333, %332 : vector<2x128xf32>
    %335 = arith.divf %333, %334 : vector<2x128xf32>
    %336 = vector.extract_strided_slice %335 {offsets = [0, 0], sizes = [2, 32], strides = [1, 1]} : vector<2x128xf32> to vector<2x32xf32>
    %337 = vector.extract_strided_slice %335 {offsets = [0, 32], sizes = [2, 32], strides = [1, 1]} : vector<2x128xf32> to vector<2x32xf32>
    %338 = vector.extract_strided_slice %335 {offsets = [0, 96], sizes = [2, 32], strides = [1, 1]} : vector<2x128xf32> to vector<2x32xf32>
    %339 = vector.extract_strided_slice %330 {offsets = [0, 64], sizes = [2, 32], strides = [1, 1]} : vector<2x128xf32> to vector<2x32xf32>
    %340 = math.tanh %339 : vector<2x32xf32>
    %341 = arith.mulf %337, %322 : vector<2x32xf32>
    %342 = arith.mulf %336, %340 : vector<2x32xf32>
    %343 = arith.addf %341, %342 : vector<2x32xf32>
    %344 = math.tanh %343 : vector<2x32xf32>
    %345 = arith.mulf %338, %344 : vector<2x32xf32>
    %c6_i32_107 = arith.constant 6 : i32
    %c2_i32_108 = arith.constant 2 : i32
    %346 = arith.muli %c6_i32_107, %c2_i32_108 : i32
    %347 = arith.index_cast %346 : i32 to index
    %c0_109 = arith.constant 0 : index
    %348 = vector.load %arg14[%347, %c0_109] : memref<16x128xf32, #tpu.memory_space<vmem>>, vector<2x128xf32>
    %349 = arith.truncf %345 : vector<2x32xf32> to vector<2x32xbf16>
    %cst_110 = arith.constant dense<0.000000e+00> : vector<2x128xf32>
    %350 = tpu.matmul %349, %208, %cst_110 {dimension_numbers = #tpu.dot_dimension_numbers<[1], [0], [0], [1], [0, 0, 1, 1], [], []>} : vector<2x32xbf16>, vector<32x128xbf16>, vector<2x128xf32> -> vector<2x128xf32>
    %351 = arith.addf %348, %350 : vector<2x128xf32>
    %352 = arith.negf %351 : vector<2x128xf32>
    %353 = math.exp %352 : vector<2x128xf32>
    %cst_111 = arith.constant 1.000000e+00 : f32
    %354 = vector.broadcast %cst_111 : f32 to vector<2x128xf32>
    %355 = arith.addf %354, %353 : vector<2x128xf32>
    %356 = arith.divf %354, %355 : vector<2x128xf32>
    %357 = vector.extract_strided_slice %356 {offsets = [0, 0], sizes = [2, 32], strides = [1, 1]} : vector<2x128xf32> to vector<2x32xf32>
    %358 = vector.extract_strided_slice %356 {offsets = [0, 32], sizes = [2, 32], strides = [1, 1]} : vector<2x128xf32> to vector<2x32xf32>
    %359 = vector.extract_strided_slice %356 {offsets = [0, 96], sizes = [2, 32], strides = [1, 1]} : vector<2x128xf32> to vector<2x32xf32>
    %360 = vector.extract_strided_slice %351 {offsets = [0, 64], sizes = [2, 32], strides = [1, 1]} : vector<2x128xf32> to vector<2x32xf32>
    %361 = math.tanh %360 : vector<2x32xf32>
    %362 = arith.mulf %358, %343 : vector<2x32xf32>
    %363 = arith.mulf %357, %361 : vector<2x32xf32>
    %364 = arith.addf %362, %363 : vector<2x32xf32>
    %365 = math.tanh %364 : vector<2x32xf32>
    %366 = arith.mulf %359, %365 : vector<2x32xf32>
    %c7_i32_112 = arith.constant 7 : i32
    %c2_i32_113 = arith.constant 2 : i32
    %367 = arith.muli %c7_i32_112, %c2_i32_113 : i32
    %368 = arith.index_cast %367 : i32 to index
    %c0_114 = arith.constant 0 : index
    %369 = vector.load %arg14[%368, %c0_114] : memref<16x128xf32, #tpu.memory_space<vmem>>, vector<2x128xf32>
    %370 = arith.truncf %366 : vector<2x32xf32> to vector<2x32xbf16>
    %cst_115 = arith.constant dense<0.000000e+00> : vector<2x128xf32>
    %371 = tpu.matmul %370, %208, %cst_115 {dimension_numbers = #tpu.dot_dimension_numbers<[1], [0], [0], [1], [0, 0, 1, 1], [], []>} : vector<2x32xbf16>, vector<32x128xbf16>, vector<2x128xf32> -> vector<2x128xf32>
    %372 = arith.addf %369, %371 : vector<2x128xf32>
    %373 = arith.negf %372 : vector<2x128xf32>
    %374 = math.exp %373 : vector<2x128xf32>
    %cst_116 = arith.constant 1.000000e+00 : f32
    %375 = vector.broadcast %cst_116 : f32 to vector<2x128xf32>
    %376 = arith.addf %375, %374 : vector<2x128xf32>
    %377 = arith.divf %375, %376 : vector<2x128xf32>
    %378 = vector.extract_strided_slice %377 {offsets = [0, 0], sizes = [2, 32], strides = [1, 1]} : vector<2x128xf32> to vector<2x32xf32>
    %379 = vector.extract_strided_slice %377 {offsets = [0, 32], sizes = [2, 32], strides = [1, 1]} : vector<2x128xf32> to vector<2x32xf32>
    %380 = vector.extract_strided_slice %377 {offsets = [0, 96], sizes = [2, 32], strides = [1, 1]} : vector<2x128xf32> to vector<2x32xf32>
    %381 = vector.extract_strided_slice %372 {offsets = [0, 64], sizes = [2, 32], strides = [1, 1]} : vector<2x128xf32> to vector<2x32xf32>
    %382 = math.tanh %381 : vector<2x32xf32>
    %383 = arith.mulf %379, %364 : vector<2x32xf32>
    %384 = arith.mulf %378, %382 : vector<2x32xf32>
    %385 = arith.addf %383, %384 : vector<2x32xf32>
    %386 = math.tanh %385 : vector<2x32xf32>
    %387 = arith.mulf %380, %386 : vector<2x32xf32>
    %c8_i32_117 = arith.constant 8 : i32
    %c1_118 = arith.constant 1 : index
    %c0_119 = arith.constant 0 : index
    %c0_120 = arith.constant 0 : index
    %388 = vector.load %arg12[%c1_118, %c0_119, %c0_120] : memref<2x2x32xf32, #tpu.memory_space<vmem>>, vector<1x2x32xf32>
    %389 = vector.shape_cast %388 : vector<1x2x32xf32> to vector<2x32xf32>
    %390 = vector.shape_cast %387 : vector<2x32xf32> to vector<1x2x32xf32>
    tpu.vector_store %arg12[%c1_118, %c0_119, %c0_120], %390 {strides = array<i32>} : memref<2x2x32xf32, #tpu.memory_space<vmem>>, vector<1x2x32xf32>,
    %c1_121 = arith.constant 1 : index
    %c0_122 = arith.constant 0 : index
    %c0_123 = arith.constant 0 : index
    %391 = vector.load %arg13[%c1_121, %c0_122, %c0_123] : memref<2x2x32xf32, #tpu.memory_space<vmem>>, vector<1x2x32xf32>
    %392 = vector.shape_cast %391 : vector<1x2x32xf32> to vector<2x32xf32>
    %393 = vector.shape_cast %385 : vector<2x32xf32> to vector<1x2x32xf32>
    tpu.vector_store %arg13[%c1_121, %c0_122, %c0_123], %393 {strides = array<i32>} : memref<2x2x32xf32, #tpu.memory_space<vmem>>, vector<1x2x32xf32>,
    %394 = arith.truncf %387 : vector<2x32xf32> to vector<2x32xbf16>
    %c0_124 = arith.constant 0 : index
    %c0_125 = arith.constant 0 : index
    %395 = vector.load %arg3[%c0_124, %c0_125] : memref<32x1xf32, #tpu.memory_space<vmem>>, vector<32x1xf32>
    %396 = arith.truncf %395 : vector<32x1xf32> to vector<32x1xbf16>
    %cst_126 = arith.constant dense<0.000000e+00> : vector<2x1xf32>
    %397 = tpu.matmul %394, %396, %cst_126 {dimension_numbers = #tpu.dot_dimension_numbers<[1], [0], [0], [1], [0, 0, 1, 1], [], []>} : vector<2x32xbf16>, vector<32x1xbf16>, vector<2x1xf32> -> vector<2x1xf32>
    %c0_127 = arith.constant 0 : index
    %c0_128 = arith.constant 0 : index
    %398 = vector.load %arg4[%c0_127, %c0_128] : memref<1x1xf32, #tpu.memory_space<vmem>>, vector<1x1xf32>
    %399 = vector.broadcast %398 : vector<1x1xf32> to vector<2x1xf32>
    %400 = arith.addf %397, %399 : vector<2x1xf32>
    %401 = arith.negf %400 : vector<2x1xf32>
    %402 = math.exp %401 : vector<2x1xf32>
    %cst_129 = arith.constant 1.000000e+00 : f32
    %403 = vector.broadcast %cst_129 : f32 to vector<2x1xf32>
    %404 = arith.addf %403, %402 : vector<2x1xf32>
    %405 = arith.divf %403, %404 : vector<2x1xf32>
    %c0_130 = arith.constant 0 : index
    %c0_131 = arith.constant 0 : index
    %406 = vector.load %arg11[%c0_130, %c0_131] : memref<2x1xf32, #tpu.memory_space<vmem>>, vector<2x1xf32>
    tpu.vector_store %arg11[%c0_130, %c0_131], %405 {strides = array<i32>} : memref<2x1xf32, #tpu.memory_space<vmem>>, vector<2x1xf32>,
    return
  }
}

</mosaic_0001>

<bundles_post_ra>
// kernel: lstm_architecture_forward.1
= control target key start
LH: loop header
LB: loop body
LE: loop exit
PB: predicated region body
PF: predicated region fallthrough
CT: control target
= control target key end

     0   :  { %s2411_s0 = inlined_call_operand.vmem [shape: f32[16,32], index: 0, kind: input, shape index: {}]   ;;  %s2412_s1 = inlined_call_operand.vmem [shape: f32[2,2,32], index: 1, kind: input, shape index: {}]   ;;  %s2413_s2 = inlined_call_operand.vmem [shape: f32[2,2,32], index: 2, kind: input, shape index: {}]   ;;  %s2414_s3 = inlined_call_operand.vmem [shape: f32[32,1], index: 3, kind: input, shape index: {}]   ;;  %s2415_s4 = inlined_call_operand.<no memory space> [shape: f32[1,1], index: 4, kind: input, shape index: {}]   ;;  %s2416_s5 = inlined_call_operand.vmem [shape: f32[32,128], index: 5, kind: input, shape index: {}]   ;;  %s2417_s6 = inlined_call_operand.vmem [shape: f32[32,128], index: 6, kind: input, shape index: {}]   ;;  %s2418_s7 = inlined_call_operand.vmem [shape: f32[1,128], index: 7, kind: input, shape index: {}]   ;;  %s2419_s8 = inlined_call_operand.vmem [shape: f32[32,128], index: 8, kind: input, shape index: {}]   ;;  %s2420_s9 = inlined_call_operand.vmem [shape: f32[32,128], index: 9, kind: input, shape index: {}]   ;;  %s2421_s10 = inlined_call_operand.vmem [shape: f32[1,128], index: 10, kind: input, shape index: {}]   ;;  %s2422_s11 = inlined_call_operand.vmem [shape: f32[2,1], index: 11, kind: output, shape index: {0}]   ;;  %s2423_s12 = inlined_call_operand.hbm [shape: f32[2,2,32], index: 12, kind: output, shape index: {1}]   ;;  %s2424_s13 = inlined_call_operand.hbm [shape: f32[2,2,32], index: 13, kind: output, shape index: {2}]  }
   0x1   :  { %v19_v0 = vstv %s2415_s4 }
   0x2   :  { %20 = vst [vmem:[#allocation4] sm:$0x1] %v19_v0 }
   0x3   :  { %21 = vsyncpa [#allocation6], 0  ;;  %v46_v1 = vld [vmem:[%s2416_s5] sm:$0xff]  ;;  %v47_v2 = vld [vmem:[%s2416_s5 + $0x8] sm:$0xff]  ;;  %v1960_v4 = vmov 0.0   ;;  %vm1961_vm0 = vmmov 0  }
   0x4   :  { %v48_v3 = vld [vmem:[%s2416_s5 + $0x10] sm:$0xff]  ;;  %1620 = vmatprep.subr.bf16.mxu0 %v1960_v4  ;;  %v50_v5 = vpack.c.bf16 %v47_v2, %v46_v1  ;;  %v49_v6 = vld [vmem:[%s2416_s5 + $0x18] sm:$0xff]  ;;  %1624 = vmatprep.mubr.msk.bf16.mxu0 %vm1961_vm0, %v1960_v4  ;;  %v52_v7 = vld [vmem:[%s2417_s6] sm:$0xff] }
   0x5   :  { %1628 = vmatprep.subr.bf16.mxu1 %v1960_v4  ;;  %v53_v8 = vld [vmem:[%s2417_s6 + $0x8] sm:$0xff]  ;;  %v54_v9 = vld [vmem:[%s2417_s6 + $0x10] sm:$0xff]  ;;  %1632 = vmatprep.mubr.msk.bf16.mxu1 %vm1961_vm0, %v1960_v4  ;;  %v51_v10 = vpack.c.bf16 %v49_v6, %v48_v3  ;;  %v59_v11 = vld [vmem:[%s2411_s0] sm:$0xff] }
   0x6   :  { %1621 = vmatpush3.bf16.msra.mxu0 %v50_v5  ;;  %v60_v12 = vld [vmem:[%s2411_s0 + $0x8] sm:$0xff]  ;;  %v2074_v13 = vpack.c.bf16 %v53_v8, %v52_v7  ;;  %v55_v14 = vld [vmem:[%s2417_s6 + $0x18] sm:$0xff] }
   0x7   :  { %1622 = vmatprep.subr.bf16.mxu0 %v1960_v4 }
   0x8   :  { %22 = vsyncpa [#allocation8], 0  ;;  %1629 = vmatpush3.bf16.msra.mxu1 %v2074_v13  ;;  %v2081_v15 = vpack.c.bf16 %v55_v14, %v54_v9  ;;  %v115_v16 = vld [vmem:[%s2412_s1] sm:$0x3]  ;;  %v61_v17 = vpack.c.bf16 %v60_v12, %v59_v11  ;;  %vm68_vm1 = vcmask 261120   ;;  %s1962_s30 = smov 64  }
   0x9   :  { %1630 = vmatprep.subr.bf16.mxu1 %v1960_v4  ;;  %v118_v18 = vpack.c.bf16 %v115_v16, %v115_v16  ;;  %v1522_v19 = vld [vmem:[%s2418_s7] ss:$0 sm:$0xff]  ;;  %s1963_s15 = smov 32   ;;  %vm195_vm2 = vcmask 254976   ;;  %s1964_s20 = smov 96  }
   0xa   :  { %1623 = vmatpush3.bf16.msra.mxu0 %v51_v10  ;;  %v116_v33 = vld [vmem:[%s2413_s2] sm:$0x3]  ;;  %s1966_s21 = smov [#allocation7]  }
   0xb   :  { %1636 = vmatprep.subr.bf16.mxu0 %v1960_v4  ;;  %s1505_s22 = sshll.u32 %s1966_s21, 4  ;;  %s1506_s22 = int_to_ptr.vmem [resolvable:$true] %s1505_s22 }
   0xc   :  { %1631 = vmatpush3.bf16.msra.mxu1 %v2081_v15 }
   0xd   :  { %1625 = vmatmul.mubr.msk.bf16.vlgmr.msra.gmra.mrb[0].mxu0 %vm68_vm1, %v61_v17  ;;  %1644 = vmatprep.subr.bf16.mxu1 %v1960_v4 }
   0xe   :  { %1637 = vmatpush3.bf16.msra.mxu0 %v2074_v13  ;;  %1640 = vmatprep.mubr.msk.bf16.mxu0 %vm1961_vm0, %v1960_v4 }
   0xf   :  { %1633 = vmatmul.mubr.msk.bf16.vlgmr.msra.gmra.mrb[0].mxu1 %vm68_vm1, %v118_v18  ;;  %1638 = vmatprep.subr.bf16.mxu0 %v1960_v4 }
  0x10   :  { %1645 = vmatpush3.bf16.msra.mxu1 %v2074_v13  ;;  %1648 = vmatprep.mubr.msk.bf16.mxu1 %vm1961_vm0, %v1960_v4 }
  0x11   :  { %1646 = vmatprep.subr.bf16.mxu1 %v1960_v4 }
  0x12   :  { %1639 = vmatpush3.bf16.msra.mxu0 %v2081_v15 }
  0x13   :  { %1652 = vmatprep.subr.bf16.mxu0 %v1960_v4 }
  0x14   :  { %1647 = vmatpush3.bf16.msra.mxu1 %v2081_v15 }
  0x15   :  { %1660 = vmatprep.subr.bf16.mxu1 %v1960_v4 }
  0xe0   :  { %v106_v20 = vpop.f32.mrb[0].mxu0 }
  0xe1   :  { %v107_v21 = vadd.f32 %v1522_v19, %v106_v20  ;;  %v1626_v22 = vpop.f32.mrb[1].mxu0 }
  0xe2   :  { %v109_v23 = vpop.f32.mrb[2].mxu0  ;;  %v156_v24 = vpop.f32.mrb[0].mxu1 }
  0xe3   :  { %113 = vst [vmem:[#allocation2] sm:$0xff] %v107_v21  ;;  %v110_v25 = vadd.f32 %v1522_v19, %v109_v23  ;;  %v1627_v26 = vpop.f32.mrb[3].mxu0  ;;  %v1634_v27 = vpop.f32.mrb[1].mxu1 }
  0xe4   :  { %v159_v28 = vpop.f32.mrb[2].mxu1 }
  0xe5   :  { %114 = vst [vmem:[#allocation2 + $0x8] sm:$0xff] %v110_v25  ;;  %v1635_v29 = vpop.f32.mrb[3].mxu1 }
  0xea   :  { %v117_v30 = vld [vmem:[#allocation2] sm:$0x3]  ;;  %v197_v49 = vld [vmem:[#allocation2 + $0x2] sm:$0x3]  ;;  %v275_v7 = vld [vmem:[#allocation2 + $0x4] sm:$0x3] }
  0xeb   :  { %v162_v31 = vadd.f32 %v156_v24, %v117_v30  ;;  %v353_v30 = vld [vmem:[#allocation2 + $0x6] sm:$0x3] }
  0xed   :  { %1780 = vtanh.f32 %v162_v31  ;;  %v1525_v34 = vmul.f32 -1.442695, %v162_v31 }
  0xef   :  { %1782 = vpow2.f32 %v1525_v34 }
  0xf7   :  { %v1781_v32 = vpop.eup %1780 }
  0xf8   :  { %176 = vrot.lane.b32.xlu0 %v1781_v32, %s1962_s30 }
  0xf9   :  { %v1783_v35 = vpop.eup %1782 }
  0xfa   :  { %v166_v36 = vadd.f32 1.0, %v1783_v35 }
  0xfc   :  { %171 = vrot.lane.b32.xlu0 %v116_v33, %s1963_s15  ;;  %1784 = vrcp.f32 %v166_v36 }
 0x106   :  { %v1785_v37 = vpop.eup %1784 }
 0x16a   :  { %v177_v38 = vpop.permute.xlu0 %176 }
 0x16b   :  { %v179_v39 = vmul.f32 %v1785_v37, %v177_v38 }
 0x16d   :  { %181 = vrot.lane.b32.xlu1 %v179_v39, %s1963_s15 }
 0x16e   :  { %v172_v40 = vpop.permute.xlu0 %171 }
 0x16f   :  { %v174_v41 = vmul.f32 %v1785_v37, %v172_v40 }
 0x1df   :  { %v182_v42 = vpop.permute.xlu1 %181 }
 0x1e0   :  { %v184_v43 = vadd.f32 %v182_v42, %v174_v41 }
 0x1e2   :  { %1786 = vtanh.f32 %v184_v43 }
 0x1ec   :  { %v1787_v44 = vpop.eup %1786 }
 0x1ed   :  { %187 = vrot.lane.b32.xlu1 %v1787_v44, %s1962_s30 }
 0x25f   :  { %v188_v45 = vpop.permute.xlu1 %187 }
 0x260   :  { %v2114_v46 = vmul.f32 %v1785_v37, %v188_v45 }
 0x262   :  { %v198_v47 = vpack.c.bf16 %v2114_v46, %v2114_v46 }
 0x264   :  { %200 = vrot.lane.b32.xlu0 %v198_v47, %s1963_s15 }
 0x2d6   :  { %v201_v48 = vpop.permute.xlu0 %200 }
 0x2d7   :  { %1641 = vmatmul.mubr.msk.bf16.vlgmr.msra.gmra.mrb[4].mxu0 %vm68_vm1, %v201_v48 }
 0x2d8   :  { %1653 = vmatpush3.bf16.msra.mxu0 %v2074_v13  ;;  %1656 = vmatprep.mubr.msk.bf16.mxu0 %vm1961_vm0, %v1960_v4 }
 0x2d9   :  { %1654 = vmatprep.subr.bf16.mxu0 %v1960_v4 }
 0x2dc   :  { %1655 = vmatpush3.bf16.msra.mxu0 %v2081_v15 }
 0x2dd   :  { %1668 = vmatprep.subr.bf16.mxu0 %v1960_v4 }
 0x3aa   :  { %v239_v50 = vpop.f32.mrb[4].mxu0 }
 0x3ab   :  { %v245_v51 = vadd.f32 %v239_v50, %v197_v49  ;;  %v1642_v52 = vpop.f32.mrb[5].mxu0 }
 0x3ac   :  { %v242_v53 = vpop.f32.mrb[6].mxu0  ;;  %v431_v52 = vld [vmem:[#allocation2 + $0x8] sm:$0x3] }
 0x3ad   :  { %1788 = vtanh.f32 %v245_v51  ;;  %v1643_v54 = vpop.f32.mrb[7].mxu0  ;;  %v1527_v56 = vmul.f32 -1.442695, %v245_v51 }
 0x3af   :  { %1790 = vpow2.f32 %v1527_v56 }
 0x3b7   :  { %v1789_v55 = vpop.eup %1788 }
 0x3b8   :  { %255 = vrot.lane.b32.xlu1 %v1789_v55, %s1962_s30 }
 0x3b9   :  { %v1791_v57 = vpop.eup %1790 }
 0x3ba   :  { %v249_v58 = vadd.f32 1.0, %v1791_v57 }
 0x3bc   :  { %1792 = vrcp.f32 %v249_v58 }
 0x3c6   :  { %v1793_v59 = vpop.eup %1792 }
 0x3c7   :  { %v253_v62 = vmul.f32 %v1793_v59, %v184_v43 }
 0x42a   :  { %v256_v60 = vpop.permute.xlu1 %255 }
 0x42b   :  { %v258_v61 = vmul.f32 %v1793_v59, %v256_v60 }
 0x42d   :  { %260 = vrot.lane.b32.xlu0 %v258_v61, %s1963_s15 }
 0x49f   :  { %v261_v63 = vpop.permute.xlu0 %260 }
 0x4a0   :  { %v263_v0 = vadd.f32 %v261_v63, %v253_v62 }
 0x4a2   :  { %1794 = vtanh.f32 %v263_v0 }
 0x4ac   :  { %v1795_v1 = vpop.eup %1794 }
 0x4ad   :  { %266 = vrot.lane.b32.xlu1 %v1795_v1, %s1962_s30 }
 0x51f   :  { %v267_v2 = vpop.permute.xlu1 %266 }
 0x520   :  { %v2129_v3 = vmul.f32 %v1793_v59, %v267_v2 }
 0x522   :  { %v276_v5 = vpack.c.bf16 %v2129_v3, %v2129_v3 }
 0x524   :  { %278 = vrot.lane.b32.xlu0 %v276_v5, %s1963_s15 }
 0x596   :  { %v279_v6 = vpop.permute.xlu0 %278 }
 0x597   :  { %1649 = vmatmul.mubr.msk.bf16.vlgmr.msra.gmra.mrb[4].mxu1 %vm68_vm1, %v279_v6 }
 0x598   :  { %1661 = vmatpush3.bf16.msra.mxu1 %v2074_v13  ;;  %1664 = vmatprep.mubr.msk.bf16.mxu1 %vm1961_vm0, %v1960_v4 }
 0x599   :  { %1662 = vmatprep.subr.bf16.mxu1 %v1960_v4 }
 0x59c   :  { %1663 = vmatpush3.bf16.msra.mxu1 %v2081_v15 }
 0x59d   :  { %1676 = vmatprep.subr.bf16.mxu1 %v1960_v4 }
 0x66a   :  { %v317_v8 = vpop.f32.mrb[4].mxu1 }
 0x66b   :  { %v323_v9 = vadd.f32 %v317_v8, %v275_v7  ;;  %v1650_v10 = vpop.f32.mrb[5].mxu1 }
 0x66c   :  { %v320_v11 = vpop.f32.mrb[6].mxu1 }
 0x66d   :  { %1796 = vtanh.f32 %v323_v9  ;;  %v1651_v12 = vpop.f32.mrb[7].mxu1  ;;  %v1529_v16 = vmul.f32 -1.442695, %v323_v9  ;;  %v509_v11 = vld [vmem:[#allocation2 + $0xa] sm:$0x3] }
 0x66f   :  { %1798 = vpow2.f32 %v1529_v16 }
 0x677   :  { %v1797_v14 = vpop.eup %1796 }
 0x678   :  { %333 = vrot.lane.b32.xlu1 %v1797_v14, %s1962_s30 }
 0x679   :  { %v1799_v17 = vpop.eup %1798 }
 0x67a   :  { %v327_v18 = vadd.f32 1.0, %v1799_v17 }
 0x67c   :  { %1800 = vrcp.f32 %v327_v18 }
 0x686   :  { %v1801_v19 = vpop.eup %1800 }
 0x687   :  { %v331_v22 = vmul.f32 %v1801_v19, %v263_v0 }
 0x6ea   :  { %v334_v20 = vpop.permute.xlu1 %333 }
 0x6eb   :  { %v336_v21 = vmul.f32 %v1801_v19, %v334_v20 }
 0x6ed   :  { %338 = vrot.lane.b32.xlu0 %v336_v21, %s1963_s15 }
 0x75f   :  { %v339_v23 = vpop.permute.xlu0 %338 }
 0x760   :  { %v341_v24 = vadd.f32 %v339_v23, %v331_v22 }
 0x762   :  { %1802 = vtanh.f32 %v341_v24 }
 0x76c   :  { %v1803_v25 = vpop.eup %1802 }
 0x76d   :  { %344 = vrot.lane.b32.xlu1 %v1803_v25, %s1962_s30 }
 0x7df   :  { %v345_v26 = vpop.permute.xlu1 %344 }
 0x7e0   :  { %v2144_v27 = vmul.f32 %v1801_v19, %v345_v26 }
 0x7e2   :  { %v354_v28 = vpack.c.bf16 %v2144_v27, %v2144_v27 }
 0x7e4   :  { %356 = vrot.lane.b32.xlu0 %v354_v28, %s1963_s15 }
 0x856   :  { %v357_v29 = vpop.permute.xlu0 %356 }
 0x857   :  { %1657 = vmatmul.mubr.msk.bf16.vlgmr.msra.gmra.mrb[8].mxu0 %vm68_vm1, %v357_v29 }
 0x858   :  { %1669 = vmatpush3.bf16.msra.mxu0 %v2074_v13  ;;  %1672 = vmatprep.mubr.msk.bf16.mxu0 %vm1961_vm0, %v1960_v4 }
 0x859   :  { %1670 = vmatprep.subr.bf16.mxu0 %v1960_v4 }
 0x85c   :  { %1671 = vmatpush3.bf16.msra.mxu0 %v2081_v15 }
 0x85d   :  { %1684 = vmatprep.subr.bf16.mxu0 %v1960_v4 }
 0x92a   :  { %v395_v31 = vpop.f32.mrb[8].mxu0 }
 0x92b   :  { %v401_v32 = vadd.f32 %v395_v31, %v353_v30  ;;  %v1658_v33 = vpop.f32.mrb[9].mxu0 }
 0x92c   :  { %v398_v34 = vpop.f32.mrb[10].mxu0  ;;  %v587_v33 = vld [vmem:[#allocation2 + $0xc] sm:$0x3] }
 0x92d   :  { %1804 = vtanh.f32 %v401_v32  ;;  %v1659_v35 = vpop.f32.mrb[11].mxu0  ;;  %v1531_v37 = vmul.f32 -1.442695, %v401_v32 }
 0x92f   :  { %1806 = vpow2.f32 %v1531_v37 }
 0x937   :  { %v1805_v36 = vpop.eup %1804 }
 0x938   :  { %411 = vrot.lane.b32.xlu1 %v1805_v36, %s1962_s30 }
 0x939   :  { %v1807_v38 = vpop.eup %1806 }
 0x93a   :  { %v405_v39 = vadd.f32 1.0, %v1807_v38 }
 0x93c   :  { %1808 = vrcp.f32 %v405_v39 }
 0x946   :  { %v1809_v40 = vpop.eup %1808 }
 0x947   :  { %v409_v43 = vmul.f32 %v1809_v40, %v341_v24 }
 0x9aa   :  { %v412_v41 = vpop.permute.xlu1 %411 }
 0x9ab   :  { %v414_v42 = vmul.f32 %v1809_v40, %v412_v41 }
 0x9ad   :  { %416 = vrot.lane.b32.xlu0 %v414_v42, %s1963_s15 }
 0xa1f   :  { %v417_v44 = vpop.permute.xlu0 %416 }
 0xa20   :  { %v419_v45 = vadd.f32 %v417_v44, %v409_v43 }
 0xa22   :  { %1810 = vtanh.f32 %v419_v45 }
 0xa2c   :  { %v1811_v47 = vpop.eup %1810 }
 0xa2d   :  { %422 = vrot.lane.b32.xlu1 %v1811_v47, %s1962_s30 }
 0xa9f   :  { %v423_v48 = vpop.permute.xlu1 %422 }
 0xaa0   :  { %v2159_v49 = vmul.f32 %v1809_v40, %v423_v48 }
 0xaa2   :  { %v432_v50 = vpack.c.bf16 %v2159_v49, %v2159_v49 }
 0xaa4   :  { %434 = vrot.lane.b32.xlu0 %v432_v50, %s1963_s15 }
 0xb16   :  { %v435_v51 = vpop.permute.xlu0 %434 }
 0xb17   :  { %1665 = vmatmul.mubr.msk.bf16.vlgmr.msra.gmra.mrb[8].mxu1 %vm68_vm1, %v435_v51 }
 0xb18   :  { %1677 = vmatpush3.bf16.msra.mxu1 %v2074_v13  ;;  %1680 = vmatprep.mubr.msk.bf16.mxu1 %vm1961_vm0, %v1960_v4 }
 0xb19   :  { %1678 = vmatprep.subr.bf16.mxu1 %v1960_v4 }
 0xb1c   :  { %1679 = vmatpush3.bf16.msra.mxu1 %v2081_v15 }
 0xb1d   :  { %1692 = vmatprep.subr.bf16.mxu1 %v1960_v4 }
 0xbea   :  { %v473_v53 = vpop.f32.mrb[8].mxu1 }
 0xbeb   :  { %v479_v54 = vadd.f32 %v473_v53, %v431_v52  ;;  %v1666_v55 = vpop.f32.mrb[9].mxu1 }
 0xbec   :  { %v476_v56 = vpop.f32.mrb[10].mxu1 }
 0xbed   :  { %1812 = vtanh.f32 %v479_v54  ;;  %v1667_v57 = vpop.f32.mrb[11].mxu1  ;;  %v1533_v59 = vmul.f32 -1.442695, %v479_v54  ;;  %v665_v56 = vld [vmem:[#allocation2 + $0xe] sm:$0x3] }
 0xbef   :  { %1814 = vpow2.f32 %v1533_v59 }
 0xbf7   :  { %v1813_v58 = vpop.eup %1812 }
 0xbf8   :  { %489 = vrot.lane.b32.xlu1 %v1813_v58, %s1962_s30 }
 0xbf9   :  { %v1815_v60 = vpop.eup %1814 }
 0xbfa   :  { %v483_v61 = vadd.f32 1.0, %v1815_v60 }
 0xbfc   :  { %1816 = vrcp.f32 %v483_v61 }
 0xc06   :  { %v1817_v62 = vpop.eup %1816 }
 0xc07   :  { %v487_v1 = vmul.f32 %v1817_v62, %v419_v45 }
 0xc6a   :  { %v490_v63 = vpop.permute.xlu1 %489 }
 0xc6b   :  { %v492_v0 = vmul.f32 %v1817_v62, %v490_v63 }
 0xc6d   :  { %494 = vrot.lane.b32.xlu0 %v492_v0, %s1963_s15 }
 0xcdf   :  { %v495_v2 = vpop.permute.xlu0 %494 }
 0xce0   :  { %v497_v5 = vadd.f32 %v495_v2, %v487_v1 }
 0xce2   :  { %1818 = vtanh.f32 %v497_v5 }
 0xcec   :  { %v1819_v6 = vpop.eup %1818 }
 0xced   :  { %500 = vrot.lane.b32.xlu1 %v1819_v6, %s1962_s30 }
 0xd5f   :  { %v501_v7 = vpop.permute.xlu1 %500 }
 0xd60   :  { %v2174_v8 = vmul.f32 %v1817_v62, %v501_v7 }
 0xd62   :  { %v510_v9 = vpack.c.bf16 %v2174_v8, %v2174_v8 }
 0xd64   :  { %512 = vrot.lane.b32.xlu0 %v510_v9, %s1963_s15 }
 0xdd6   :  { %v513_v10 = vpop.permute.xlu0 %512 }
 0xdd7   :  { %1673 = vmatmul.mubr.msk.bf16.vlgmr.msra.gmra.mrb[12].mxu0 %vm68_vm1, %v513_v10 }
 0xdd8   :  { %1685 = vmatpush3.bf16.msra.mxu0 %v2074_v13  ;;  %1688 = vmatprep.mubr.msk.bf16.mxu0 %vm1961_vm0, %v1960_v4 }
 0xdd9   :  { %1686 = vmatprep.subr.bf16.mxu0 %v1960_v4 }
 0xddc   :  { %1687 = vmatpush3.bf16.msra.mxu0 %v2081_v15 }
 0xddd   :  { %1700 = vmatprep.subr.bf16.mxu0 %v1960_v4 }
 0xeaa   :  { %v551_v12 = vpop.f32.mrb[12].mxu0 }
 0xeab   :  { %v557_v14 = vadd.f32 %v551_v12, %v509_v11  ;;  %v1674_v16 = vpop.f32.mrb[13].mxu0 }
 0xeac   :  { %v554_v17 = vpop.f32.mrb[14].mxu0  ;;  %v750_v16 = vld [vmem:[%s2419_s8 + $0x8] sm:$0xff] }
 0xead   :  { %1820 = vtanh.f32 %v557_v14  ;;  %v1675_v18 = vpop.f32.mrb[15].mxu0  ;;  %v1535_v13 = vmul.f32 -1.442695, %v557_v14  ;;  %v749_v14 = vld [vmem:[%s2419_s8] sm:$0xff]  ;;  %v751_v17 = vld [vmem:[%s2419_s8 + $0x10] sm:$0xff] }
 0xeae   :  { %v753_v18 = vpack.c.bf16 %v750_v16, %v749_v14 }
 0xeaf   :  { %1822 = vpow2.f32 %v1535_v13  ;;  %v756_v13 = vld [vmem:[%s2420_s9 + $0x8] sm:$0xff] }
 0xeb7   :  { %v1821_v19 = vpop.eup %1820 }
 0xeb8   :  { %567 = vrot.lane.b32.xlu1 %v1821_v19, %s1962_s30  ;;  %v755_v19 = vld [vmem:[%s2420_s9] sm:$0xff] }
 0xeb9   :  { %v1823_v20 = vpop.eup %1822 }
 0xeba   :  { %v561_v21 = vadd.f32 1.0, %v1823_v20  ;;  %v2247_v20 = vpack.c.bf16 %v756_v13, %v755_v19 }
 0xebc   :  { %1824 = vrcp.f32 %v561_v21 }
 0xec6   :  { %v1825_v22 = vpop.eup %1824 }
 0xec7   :  { %v565_v24 = vmul.f32 %v1825_v22, %v497_v5 }
 0xf2a   :  { %v568_v23 = vpop.permute.xlu1 %567 }
 0xf2b   :  { %v570_v15 = vmul.f32 %v1825_v22, %v568_v23  ;;  %v758_v23 = vld [vmem:[%s2420_s9 + $0x18] sm:$0xff] }
 0xf2d   :  { %572 = vrot.lane.b32.xlu0 %v570_v15, %s1963_s15 }
 0xf9f   :  { %v573_v25 = vpop.permute.xlu0 %572 }
 0xfa0   :  { %v575_v26 = vadd.f32 %v573_v25, %v565_v24  ;;  %v1542_v25 = vld [vmem:[%s2412_s1 + $0x2] sm:$0x3] }
 0xfa2   :  { %1826 = vtanh.f32 %v575_v26 }
 0xfac   :  { %v1827_v28 = vpop.eup %1826 }
 0xfad   :  { %578 = vrot.lane.b32.xlu1 %v1827_v28, %s1962_s30  ;;  %v822_v28 = vpack.c.bf16 %v1542_v25, %v1542_v25 }
0x101f   :  { %v579_v29 = vpop.permute.xlu1 %578 }
0x1020   :  { %v2189_v30 = vmul.f32 %v1825_v22, %v579_v29  ;;  %v757_v22 = vld [vmem:[%s2420_s9 + $0x10] sm:$0xff]  ;;  %v1543_v29 = vld [vmem:[%s2413_s2 + $0x2] sm:$0x3] }
0x1021   :  { %v2256_v24 = vpack.c.bf16 %v758_v23, %v757_v22 }
0x1022   :  { %v588_v31 = vpack.c.bf16 %v2189_v30, %v2189_v30 }
0x1024   :  { %590 = vrot.lane.b32.xlu0 %v588_v31, %s1963_s15 }
0x1096   :  { %v591_v32 = vpop.permute.xlu0 %590 }
0x1097   :  { %1681 = vmatmul.mubr.msk.bf16.vlgmr.msra.gmra.mrb[12].mxu1 %vm68_vm1, %v591_v32 }
0x1098   :  { %1696 = vmatprep.mubr.msk.bf16.mxu1 %vm1961_vm0, %v1960_v4  ;;  %1693 = vmatpush3.bf16.msra.mxu1 %v753_v18 }
0x1099   :  { %1694 = vmatprep.subr.bf16.mxu1 %v1960_v4 }
0x116a   :  { %v629_v34 = vpop.f32.mrb[12].mxu1 }
0x116b   :  { %v635_v35 = vadd.f32 %v629_v34, %v587_v33  ;;  %v1682_v36 = vpop.f32.mrb[13].mxu1 }
0x116c   :  { %v632_v37 = vpop.f32.mrb[14].mxu1 }
0x116d   :  { %1828 = vtanh.f32 %v635_v35  ;;  %v1683_v38 = vpop.f32.mrb[15].mxu1  ;;  %v1537_v40 = vmul.f32 -1.442695, %v635_v35 }
0x116f   :  { %1830 = vpow2.f32 %v1537_v40  ;;  %v1540_v40 = vld [vmem:[%s2421_s10] ss:$0 sm:$0xff] }
0x1177   :  { %v1829_v39 = vpop.eup %1828 }
0x1178   :  { %645 = vrot.lane.b32.xlu1 %v1829_v39, %s1962_s30 }
0x1179   :  { %v1831_v41 = vpop.eup %1830 }
0x117a   :  { %v639_v42 = vadd.f32 1.0, %v1831_v41 }
0x117c   :  { %1832 = vrcp.f32 %v639_v42 }
0x1186   :  { %v1833_v43 = vpop.eup %1832 }
0x1187   :  { %v643_v47 = vmul.f32 %v1833_v43, %v575_v26 }
0x11ea   :  { %v646_v44 = vpop.permute.xlu1 %645 }
0x11eb   :  { %v648_v45 = vmul.f32 %v1833_v43, %v646_v44 }
0x11ed   :  { %650 = vrot.lane.b32.xlu0 %v648_v45, %s1963_s15 }
0x125f   :  { %v651_v48 = vpop.permute.xlu0 %650 }
0x1260   :  { %v653_v50 = vadd.f32 %v651_v48, %v643_v47 }
0x1262   :  { %1834 = vtanh.f32 %v653_v50 }
0x126c   :  { %v1835_v51 = vpop.eup %1834 }
0x126d   :  { %656 = vrot.lane.b32.xlu1 %v1835_v51, %s1962_s30 }
0x12df   :  { %v657_v52 = vpop.permute.xlu1 %656 }
0x12e0   :  { %v659_v53 = vmul.f32 %v1833_v43, %v657_v52 }
0x12e2   :  { %v666_v54 = vpack.c.bf16 %v659_v53, %v659_v53 }
0x12e4   :  { %668 = vrot.lane.b32.xlu0 %v666_v54, %s1963_s15 }
0x1356   :  { %v669_v55 = vpop.permute.xlu0 %668 }
0x1357   :  { %1689 = vmatmul.mubr.msk.bf16.vlgmr.msra.gmra.mrb[16].mxu0 %vm68_vm1, %v669_v55 }
0x1358   :  { %1704 = vmatprep.mubr.msk.bf16.mxu0 %vm1961_vm0, %v1960_v4  ;;  %1701 = vmatpush3.bf16.msra.mxu0 %v2247_v20 }
0x1359   :  { %1702 = vmatprep.subr.bf16.mxu0 %v1960_v4 }
0x135c   :  { %1703 = vmatpush3.bf16.msra.mxu0 %v2256_v24 }
0x135d   :  { %1716 = vmatprep.subr.bf16.mxu0 %v1960_v4 }
0x135f   :  { %1705 = vmatmul.mubr.msk.bf16.vlgmr.msra.gmra.mrb[20].mxu0 %vm68_vm1, %v822_v28 }
0x1360   :  { %1717 = vmatpush3.bf16.msra.mxu0 %v2247_v20  ;;  %1720 = vmatprep.mubr.msk.bf16.mxu0 %vm1961_vm0, %v1960_v4 }
0x1361   :  { %1718 = vmatprep.subr.bf16.mxu0 %v1960_v4 }
0x1364   :  { %1719 = vmatpush3.bf16.msra.mxu0 %v2256_v24 }
0x1365   :  { %1732 = vmatprep.subr.bf16.mxu0 %v1960_v4 }
0x142a   :  { %v707_v57 = vpop.f32.mrb[16].mxu0 }
0x142b   :  { %v713_v58 = vadd.f32 %v707_v57, %v665_v56  ;;  %v1690_v59 = vpop.f32.mrb[17].mxu0 }
0x142c   :  { %v710_v60 = vpop.f32.mrb[18].mxu0 }
0x142d   :  { %1836 = vtanh.f32 %v713_v58  ;;  %v1691_v61 = vpop.f32.mrb[19].mxu0  ;;  %v1539_v63 = vmul.f32 -1.442695, %v713_v58 }
0x142f   :  { %1838 = vpow2.f32 %v1539_v63 }
0x1432   :  { %v860_v36 = vpop.f32.mrb[20].mxu0 }
0x1433   :  { %v1706_v37 = vpop.f32.mrb[21].mxu0 }
0x1434   :  { %v863_v38 = vpop.f32.mrb[22].mxu0 }
0x1435   :  { %v1707_v39 = vpop.f32.mrb[23].mxu0 }
0x1437   :  { %v1837_v62 = vpop.eup %1836 }
0x1438   :  { %723 = vrot.lane.b32.xlu1 %v1837_v62, %s1962_s30 }
0x1439   :  { %v1839_v0 = vpop.eup %1838 }
0x143a   :  { %v717_v1 = vadd.f32 1.0, %v1839_v0 }
0x143c   :  { %1840 = vrcp.f32 %v717_v1 }
0x1446   :  { %v1841_v2 = vpop.eup %1840 }
0x1447   :  { %v721_v7 = vmul.f32 %v1841_v2, %v653_v50 }
0x14aa   :  { %v724_v5 = vpop.permute.xlu1 %723 }
0x14ab   :  { %v726_v6 = vmul.f32 %v1841_v2, %v724_v5 }
0x14ad   :  { %728 = vrot.lane.b32.xlu0 %v726_v6, %s1963_s15 }
0x14b1   :  { %192 = vrot.lane.b32.xlu0 %v2114_v46, %s1963_s15 }
0x14b5   :  { %349 = vrot.lane.b32.xlu0 %v2144_v27, %s1963_s15 }
0x14b9   :  { %505 = vrot.lane.b32.xlu0 %v2174_v8, %s1963_s15 }
0x14bd   :  { %661 = vrot.lane.b32.xlu0 %v659_v53, %s1963_s15 }
0x151f   :  { %v729_v9 = vpop.permute.xlu0 %728 }
0x1520   :  { %v2213_v10 = vadd.f32 %v729_v9, %v721_v7 }
0x1522   :  { %1842 = vtanh.f32 %v2213_v10 }
0x1523   :  { %v193_v11 = vpop.permute.xlu0 %192 }
0x1524   :  { %196 = vst.msk [vmem:[#allocation3] sm:$0x3] %vm195_vm2, %v193_v11 }
0x1527   :  { %v350_v12 = vpop.permute.xlu0 %349 }
0x1528   :  { %352 = vst.msk [vmem:[#allocation3 + $0x4] sm:$0x3] %vm195_vm2, %v350_v12 }
0x152b   :  { %v506_v46 = vpop.permute.xlu0 %505 }
0x152c   :  { %v1843_v27 = vpop.eup %1842  ;;  %508 = vst.msk [vmem:[#allocation3 + $0x8] sm:$0x3] %vm195_vm2, %v506_v46 }
0x152d   :  { %734 = vrot.lane.b32.xlu1 %v1843_v27, %s1962_s30 }
0x152f   :  { %v662_v8 = vpop.permute.xlu0 %661 }
0x1530   :  { %664 = vst.msk [vmem:[#allocation3 + $0xc] sm:$0x3] %vm195_vm2, %v662_v8 }
0x1531   :  { %271 = vrot.lane.b32.xlu1 %v2129_v3, %s1963_s15  ;;  %v752_v3 = vld [vmem:[%s2419_s8 + $0x18] sm:$0xff] }
0x1535   :  { %427 = vrot.lane.b32.xlu1 %v2159_v49, %s1963_s15  ;;  %v754_v49 = vpack.c.bf16 %v752_v3, %v751_v17 }
0x1537   :  { %1695 = vmatpush3.bf16.msra.mxu1 %v754_v49 }
0x1538   :  { %1708 = vmatprep.subr.bf16.mxu1 %v1960_v4 }
0x1539   :  { %583 = vrot.lane.b32.xlu1 %v2189_v30, %s1963_s15 }
0x159f   :  { %v735_v21 = vpop.permute.xlu1 %734 }
0x15a0   :  { %v737_v15 = vmul.f32 %v1841_v2, %v735_v21 }
0x15a2   :  { %739 = vrot.lane.b32.xlu1 %v737_v15, %s1963_s15 }
0x15a3   :  { %v272_v26 = vpop.permute.xlu1 %271 }
0x15a4   :  { %274 = vst.msk [vmem:[#allocation3 + $0x2] sm:$0x3] %vm195_vm2, %v272_v26 }
0x15a6   :  { %875 = vrot.lane.b32.xlu1 %v1543_v29, %s1963_s15 }
0x15a7   :  { %v428_v30 = vpop.permute.xlu1 %427 }
0x15a8   :  { %430 = vst.msk [vmem:[#allocation3 + $0x6] sm:$0x3] %vm195_vm2, %v428_v30 }
0x15ab   :  { %v584_v31 = vpop.permute.xlu1 %583 }
0x15ac   :  { %586 = vst.msk [vmem:[#allocation3 + $0xa] sm:$0x3] %vm195_vm2, %v584_v31 }
0x15af   :  { %v762_v33 = vld [vmem:[#allocation3] sm:$0xff] }
0x1614   :  { %v740_v32 = vpop.permute.xlu1 %739 }
0x1615   :  { %742 = vst.msk [vmem:[#allocation3 + $0xe] sm:$0x3] %vm195_vm2, %v740_v32  ;;  %743 = vst.msk [vmem:[#allocation5] sm:$0x3] %vm195_vm2, %v740_v32 }
0x1618   :  { %v876_v58 = vpop.permute.xlu1 %875 }
0x161c   :  { %v763_v34 = vld [vmem:[#allocation3 + $0x8] sm:$0xff] }
0x161d   :  { %v764_v35 = vpack.c.bf16 %v763_v34, %v762_v33 }
0x161f   :  { %1697 = vmatmul.mubr.msk.bf16.vlgmr.msra.gmra.mrb[16].mxu1 %vm68_vm1, %v764_v35 }
0x1620   :  { %1709 = vmatpush3.bf16.msra.mxu1 %v2247_v20  ;;  %1712 = vmatprep.mubr.msk.bf16.mxu1 %vm1961_vm0, %v1960_v4 }
0x1621   :  { %1710 = vmatprep.subr.bf16.mxu1 %v1960_v4 }
0x1624   :  { %1711 = vmatpush3.bf16.msra.mxu1 %v2256_v24 }
0x1625   :  { %1724 = vmatprep.subr.bf16.mxu1 %v1960_v4 }
0x16f2   :  { %v808_v41 = vpop.f32.mrb[16].mxu1 }
0x16f3   :  { %v809_v42 = vadd.f32 %v1540_v40, %v808_v41  ;;  %v1698_v43 = vpop.f32.mrb[17].mxu1 }
0x16f4   :  { %v811_v44 = vpop.f32.mrb[18].mxu1 }
0x16f5   :  { %815 = vst [vmem:[#allocation2] sm:$0xff] %v809_v42  ;;  %v812_v45 = vadd.f32 %v1540_v40, %v811_v44  ;;  %v1699_v47 = vpop.f32.mrb[19].mxu1 }
0x16f7   :  { %816 = vst [vmem:[#allocation2 + $0x8] sm:$0xff] %v812_v45 }
0x16fc   :  { %v821_v48 = vld [vmem:[#allocation2] sm:$0x3]  ;;  %v895_v5 = vld [vmem:[#allocation2 + $0x2] sm:$0x3]  ;;  %v968_v25 = vld [vmem:[#allocation2 + $0x4] sm:$0x3] }
0x16fd   :  { %v866_v50 = vadd.f32 %v860_v36, %v821_v48  ;;  %v1041_v48 = vld [vmem:[#allocation2 + $0x6] sm:$0x3] }
0x16ff   :  { %1844 = vtanh.f32 %v866_v50  ;;  %v1545_v52 = vmul.f32 -1.442695, %v866_v50 }
0x1701   :  { %1846 = vpow2.f32 %v1545_v52 }
0x1709   :  { %v1845_v51 = vpop.eup %1844 }
0x170a   :  { %880 = vrot.lane.b32.xlu0 %v1845_v51, %s1962_s30 }
0x170b   :  { %v1847_v53 = vpop.eup %1846 }
0x170c   :  { %v870_v54 = vadd.f32 1.0, %v1847_v53 }
0x170e   :  { %1848 = vrcp.f32 %v870_v54 }
0x1718   :  { %v1849_v55 = vpop.eup %1848 }
0x1719   :  { %v878_v59 = vmul.f32 %v1849_v55, %v876_v58 }
0x177c   :  { %v881_v56 = vpop.permute.xlu0 %880 }
0x177d   :  { %v883_v57 = vmul.f32 %v1849_v55, %v881_v56 }
0x177f   :  { %885 = vrot.lane.b32.xlu0 %v883_v57, %s1963_s15 }
0x17f1   :  { %v886_v60 = vpop.permute.xlu0 %885 }
0x17f2   :  { %v888_v61 = vadd.f32 %v886_v60, %v878_v59 }
0x17f4   :  { %1850 = vtanh.f32 %v888_v61 }
0x17fe   :  { %v1851_v62 = vpop.eup %1850 }
0x17ff   :  { %891 = vrot.lane.b32.xlu1 %v1851_v62, %s1962_s30 }
0x1871   :  { %v892_v63 = vpop.permute.xlu1 %891 }
0x1872   :  { %v894_v0 = vmul.f32 %v1849_v55, %v892_v63 }
0x1874   :  { %v896_v1 = vpack.c.bf16 %v894_v0, %v894_v0 }
0x1876   :  { %898 = vrot.lane.b32.xlu0 %v896_v1, %s1963_s15 }
0x18e8   :  { %v899_v2 = vpop.permute.xlu0 %898 }
0x18e9   :  { %1713 = vmatmul.mubr.msk.bf16.vlgmr.msra.gmra.mrb[20].mxu1 %vm68_vm1, %v899_v2 }
0x18ea   :  { %1725 = vmatpush3.bf16.msra.mxu1 %v2247_v20  ;;  %1728 = vmatprep.mubr.msk.bf16.mxu1 %vm1961_vm0, %v1960_v4 }
0x18eb   :  { %1726 = vmatprep.subr.bf16.mxu1 %v1960_v4 }
0x18ee   :  { %1727 = vmatpush3.bf16.msra.mxu1 %v2256_v24 }
0x18ef   :  { %1740 = vmatprep.subr.bf16.mxu1 %v1960_v4 }
0x19bc   :  { %v937_v6 = vpop.f32.mrb[20].mxu1 }
0x19bd   :  { %v943_v7 = vadd.f32 %v937_v6, %v895_v5  ;;  %v1714_v9 = vpop.f32.mrb[21].mxu1 }
0x19be   :  { %v940_v11 = vpop.f32.mrb[22].mxu1  ;;  %v1114_v9 = vld [vmem:[#allocation2 + $0x8] sm:$0x3] }
0x19bf   :  { %1852 = vtanh.f32 %v943_v7  ;;  %v1715_v12 = vpop.f32.mrb[23].mxu1  ;;  %v1547_v27 = vmul.f32 -1.442695, %v943_v7 }
0x19c1   :  { %1854 = vpow2.f32 %v1547_v27 }
0x19c9   :  { %v1853_v46 = vpop.eup %1852 }
0x19ca   :  { %953 = vrot.lane.b32.xlu1 %v1853_v46, %s1962_s30 }
0x19cb   :  { %v1855_v8 = vpop.eup %1854 }
0x19cc   :  { %v947_v14 = vadd.f32 1.0, %v1855_v8 }
0x19ce   :  { %1856 = vrcp.f32 %v947_v14 }
0x19d8   :  { %v1857_v16 = vpop.eup %1856 }
0x19d9   :  { %v951_v3 = vmul.f32 %v1857_v16, %v888_v61 }
0x1a3c   :  { %v954_v17 = vpop.permute.xlu1 %953 }
0x1a3d   :  { %v956_v18 = vmul.f32 %v1857_v16, %v954_v17 }
0x1a3f   :  { %958 = vrot.lane.b32.xlu0 %v956_v18, %s1963_s15 }
0x1ab1   :  { %v959_v49 = vpop.permute.xlu0 %958 }
0x1ab2   :  { %v961_v19 = vadd.f32 %v959_v49, %v951_v3 }
0x1ab4   :  { %1858 = vtanh.f32 %v961_v19 }
0x1abe   :  { %v1859_v13 = vpop.eup %1858 }
0x1abf   :  { %964 = vrot.lane.b32.xlu1 %v1859_v13, %s1962_s30 }
0x1b31   :  { %v965_v21 = vpop.permute.xlu1 %964 }
0x1b32   :  { %v967_v22 = vmul.f32 %v1857_v16, %v965_v21 }
0x1b34   :  { %v969_v23 = vpack.c.bf16 %v967_v22, %v967_v22 }
0x1b36   :  { %971 = vrot.lane.b32.xlu0 %v969_v23, %s1963_s15 }
0x1ba8   :  { %v972_v15 = vpop.permute.xlu0 %971 }
0x1ba9   :  { %1721 = vmatmul.mubr.msk.bf16.vlgmr.msra.gmra.mrb[24].mxu0 %vm68_vm1, %v972_v15 }
0x1baa   :  { %1733 = vmatpush3.bf16.msra.mxu0 %v2247_v20  ;;  %1736 = vmatprep.mubr.msk.bf16.mxu0 %vm1961_vm0, %v1960_v4 }
0x1bab   :  { %1734 = vmatprep.subr.bf16.mxu0 %v1960_v4 }
0x1bae   :  { %1735 = vmatpush3.bf16.msra.mxu0 %v2256_v24 }
0x1baf   :  { %1748 = vmatprep.subr.bf16.mxu0 %v1960_v4 }
0x1c7c   :  { %v1010_v26 = vpop.f32.mrb[24].mxu0 }
0x1c7d   :  { %v1016_v28 = vadd.f32 %v1010_v26, %v968_v25  ;;  %v1722_v29 = vpop.f32.mrb[25].mxu0 }
0x1c7e   :  { %v1013_v30 = vpop.f32.mrb[26].mxu0  ;;  %v1187_v29 = vld [vmem:[#allocation2 + $0xa] sm:$0x3] }
0x1c7f   :  { %1860 = vtanh.f32 %v1016_v28  ;;  %v1723_v31 = vpop.f32.mrb[27].mxu0  ;;  %v1549_v33 = vmul.f32 -1.442695, %v1016_v28 }
0x1c81   :  { %1862 = vpow2.f32 %v1549_v33 }
0x1c89   :  { %v1861_v32 = vpop.eup %1860 }
0x1c8a   :  { %1026 = vrot.lane.b32.xlu1 %v1861_v32, %s1962_s30 }
0x1c8b   :  { %v1863_v34 = vpop.eup %1862 }
0x1c8c   :  { %v1020_v35 = vadd.f32 1.0, %v1863_v34 }
0x1c8e   :  { %1864 = vrcp.f32 %v1020_v35 }
0x1c98   :  { %v1865_v36 = vpop.eup %1864 }
0x1c99   :  { %v1024_v39 = vmul.f32 %v1865_v36, %v961_v19 }
0x1cfc   :  { %v1027_v37 = vpop.permute.xlu1 %1026 }
0x1cfd   :  { %v1029_v38 = vmul.f32 %v1865_v36, %v1027_v37 }
0x1cff   :  { %1031 = vrot.lane.b32.xlu0 %v1029_v38, %s1963_s15 }
0x1d71   :  { %v1032_v40 = vpop.permute.xlu0 %1031 }
0x1d72   :  { %v1034_v41 = vadd.f32 %v1032_v40, %v1024_v39 }
0x1d74   :  { %1866 = vtanh.f32 %v1034_v41 }
0x1d7e   :  { %v1867_v42 = vpop.eup %1866 }
0x1d7f   :  { %1037 = vrot.lane.b32.xlu1 %v1867_v42, %s1962_s30 }
0x1df1   :  { %v1038_v43 = vpop.permute.xlu1 %1037 }
0x1df2   :  { %v1040_v44 = vmul.f32 %v1865_v36, %v1038_v43 }
0x1df4   :  { %v1042_v45 = vpack.c.bf16 %v1040_v44, %v1040_v44 }
0x1df6   :  { %1044 = vrot.lane.b32.xlu0 %v1042_v45, %s1963_s15 }
0x1e68   :  { %v1045_v47 = vpop.permute.xlu0 %1044 }
0x1e69   :  { %1729 = vmatmul.mubr.msk.bf16.vlgmr.msra.gmra.mrb[24].mxu1 %vm68_vm1, %v1045_v47 }
0x1e6a   :  { %1741 = vmatpush3.bf16.msra.mxu1 %v2247_v20  ;;  %1744 = vmatprep.mubr.msk.bf16.mxu1 %vm1961_vm0, %v1960_v4 }
0x1e6b   :  { %1742 = vmatprep.subr.bf16.mxu1 %v1960_v4 }
0x1e6e   :  { %1743 = vmatpush3.bf16.msra.mxu1 %v2256_v24 }
0x1e6f   :  { %1756 = vmatprep.subr.bf16.mxu1 %v1960_v4 }
0x1f3c   :  { %v1083_v50 = vpop.f32.mrb[24].mxu1 }
0x1f3d   :  { %v1089_v51 = vadd.f32 %v1083_v50, %v1041_v48  ;;  %v1730_v52 = vpop.f32.mrb[25].mxu1  ;;  %v1260_v50 = vld [vmem:[#allocation2 + $0xc] sm:$0x3] }
0x1f3e   :  { %v1086_v53 = vpop.f32.mrb[26].mxu1 }
0x1f3f   :  { %1868 = vtanh.f32 %v1089_v51  ;;  %v1731_v54 = vpop.f32.mrb[27].mxu1  ;;  %v1551_v56 = vmul.f32 -1.442695, %v1089_v51 }
0x1f41   :  { %1870 = vpow2.f32 %v1551_v56 }
0x1f49   :  { %v1869_v55 = vpop.eup %1868 }
0x1f4a   :  { %1099 = vrot.lane.b32.xlu1 %v1869_v55, %s1962_s30 }
0x1f4b   :  { %v1871_v57 = vpop.eup %1870 }
0x1f4c   :  { %v1093_v58 = vadd.f32 1.0, %v1871_v57 }
0x1f4e   :  { %1872 = vrcp.f32 %v1093_v58 }
0x1f58   :  { %v1873_v59 = vpop.eup %1872 }
0x1f59   :  { %v1097_v62 = vmul.f32 %v1873_v59, %v1034_v41 }
0x1fbc   :  { %v1100_v60 = vpop.permute.xlu1 %1099 }
0x1fbd   :  { %v1102_v61 = vmul.f32 %v1873_v59, %v1100_v60 }
0x1fbf   :  { %1104 = vrot.lane.b32.xlu0 %v1102_v61, %s1963_s15 }
0x2031   :  { %v1105_v63 = vpop.permute.xlu0 %1104 }
0x2032   :  { %v1107_v0 = vadd.f32 %v1105_v63, %v1097_v62 }
0x2034   :  { %1874 = vtanh.f32 %v1107_v0 }
0x203e   :  { %v1875_v1 = vpop.eup %1874 }
0x203f   :  { %1110 = vrot.lane.b32.xlu1 %v1875_v1, %s1962_s30 }
0x20b1   :  { %v1111_v2 = vpop.permute.xlu1 %1110 }
0x20b2   :  { %v1113_v5 = vmul.f32 %v1873_v59, %v1111_v2 }
0x20b4   :  { %v1115_v6 = vpack.c.bf16 %v1113_v5, %v1113_v5 }
0x20b6   :  { %1117 = vrot.lane.b32.xlu0 %v1115_v6, %s1963_s15 }
0x2128   :  { %v1118_v7 = vpop.permute.xlu0 %1117 }
0x2129   :  { %1737 = vmatmul.mubr.msk.bf16.vlgmr.msra.gmra.mrb[28].mxu0 %vm68_vm1, %v1118_v7 }
0x212a   :  { %1749 = vmatpush3.bf16.msra.mxu0 %v2247_v20  ;;  %1752 = vmatprep.mubr.msk.bf16.mxu0 %vm1961_vm0, %v1960_v4 }
0x212b   :  { %1750 = vmatprep.subr.bf16.mxu0 %v1960_v4 }
0x212e   :  { %1751 = vmatpush3.bf16.msra.mxu0 %v2256_v24 }
0x212f   :  { %1764 = vmatprep.subr.bf16.mxu0 %v1960_v4 }
0x21fc   :  { %v1156_v11 = vpop.f32.mrb[28].mxu0 }
0x21fd   :  { %v1162_v12 = vadd.f32 %v1156_v11, %v1114_v9  ;;  %v1738_v46 = vpop.f32.mrb[29].mxu0  ;;  %v1333_v11 = vld [vmem:[#allocation2 + $0xe] sm:$0x3] }
0x21fe   :  { %v1159_v27 = vpop.f32.mrb[30].mxu0 }
0x21ff   :  { %1876 = vtanh.f32 %v1162_v12  ;;  %v1739_v8 = vpop.f32.mrb[31].mxu0  ;;  %v1553_v16 = vmul.f32 -1.442695, %v1162_v12 }
0x2201   :  { %1878 = vpow2.f32 %v1553_v16 }
0x2209   :  { %v1877_v14 = vpop.eup %1876 }
0x220a   :  { %1172 = vrot.lane.b32.xlu1 %v1877_v14, %s1962_s30 }
0x220b   :  { %v1879_v17 = vpop.eup %1878 }
0x220c   :  { %v1166_v18 = vadd.f32 1.0, %v1879_v17 }
0x220e   :  { %1880 = vrcp.f32 %v1166_v18 }
0x2218   :  { %v1881_v3 = vpop.eup %1880 }
0x2219   :  { %v1170_v13 = vmul.f32 %v1881_v3, %v1107_v0 }
0x227c   :  { %v1173_v49 = vpop.permute.xlu1 %1172 }
0x227d   :  { %v1175_v19 = vmul.f32 %v1881_v3, %v1173_v49 }
0x227f   :  { %1177 = vrot.lane.b32.xlu0 %v1175_v19, %s1963_s15 }
0x22f1   :  { %v1178_v21 = vpop.permute.xlu0 %1177 }
0x22f2   :  { %v1180_v22 = vadd.f32 %v1178_v21, %v1170_v13 }
0x22f4   :  { %1882 = vtanh.f32 %v1180_v22 }
0x22fe   :  { %v1883_v23 = vpop.eup %1882 }
0x22ff   :  { %1183 = vrot.lane.b32.xlu1 %v1883_v23, %s1962_s30 }
0x2371   :  { %v1184_v15 = vpop.permute.xlu1 %1183 }
0x2372   :  { %v1186_v25 = vmul.f32 %v1881_v3, %v1184_v15  ;;  %v1419_v15 = vld [vmem:[%s2414_s3] sm:$0xff] }
0x2374   :  { %v1188_v26 = vpack.c.bf16 %v1186_v25, %v1186_v25  ;;  %v1420_v25 = vld [vmem:[%s2414_s3 + $0x8] sm:$0xff] }
0x2376   :  { %1190 = vrot.lane.b32.xlu0 %v1188_v26, %s1963_s15  ;;  %v1421_v26 = vld [vmem:[%s2414_s3 + $0x10] sm:$0xff] }
0x23e8   :  { %v1191_v28 = vpop.permute.xlu0 %1190 }
0x23e9   :  { %1745 = vmatmul.mubr.msk.bf16.vlgmr.msra.gmra.mrb[28].mxu1 %vm68_vm1, %v1191_v28  ;;  %v1423_v28 = vpack.c.bf16 %v1420_v25, %v1419_v15 }
0x23ea   :  { %1757 = vmatpush3.bf16.msra.mxu1 %v2247_v20  ;;  %1760 = vmatprep.mubr.msk.bf16.mxu1 %vm1961_vm0, %v1960_v4 }
0x23eb   :  { %1758 = vmatprep.subr.bf16.mxu1 %v1960_v4 }
0x23ee   :  { %1759 = vmatpush3.bf16.msra.mxu1 %v2256_v24 }
0x24bc   :  { %v1229_v30 = vpop.f32.mrb[28].mxu1 }
0x24bd   :  { %v1235_v31 = vadd.f32 %v1229_v30, %v1187_v29  ;;  %v1746_v32 = vpop.f32.mrb[29].mxu1  ;;  %v1422_v29 = vld [vmem:[%s2414_s3 + $0x18] sm:$0xff]  ;;  %s1965_s3 = smov [#allocation5]  }
0x24be   :  { %v1232_v33 = vpop.f32.mrb[30].mxu1  ;;  %v1424_v30 = vpack.c.bf16 %v1422_v29, %v1421_v26 }
0x24bf   :  { %1884 = vtanh.f32 %v1235_v31  ;;  %v1747_v34 = vpop.f32.mrb[31].mxu1  ;;  %v1555_v36 = vmul.f32 -1.442695, %v1235_v31 }
0x24c1   :  { %1886 = vpow2.f32 %v1555_v36 }
0x24c9   :  { %v1885_v35 = vpop.eup %1884 }
0x24ca   :  { %1245 = vrot.lane.b32.xlu1 %v1885_v35, %s1962_s30 }
0x24cb   :  { %v1887_v20 = vpop.eup %1886 }
0x24cc   :  { %v1239_v37 = vadd.f32 1.0, %v1887_v20 }
0x24ce   :  { %1888 = vrcp.f32 %v1239_v37 }
0x24d8   :  { %v1889_v38 = vpop.eup %1888 }
0x24d9   :  { %v1243_v24 = vmul.f32 %v1889_v38, %v1180_v22 }
0x253c   :  { %v1246_v39 = vpop.permute.xlu1 %1245 }
0x253d   :  { %v1248_v40 = vmul.f32 %v1889_v38, %v1246_v39 }
0x253f   :  { %1250 = vrot.lane.b32.xlu0 %v1248_v40, %s1963_s15 }
0x25b1   :  { %v1251_v41 = vpop.permute.xlu0 %1250 }
0x25b2   :  { %v1253_v42 = vadd.f32 %v1251_v41, %v1243_v24 }
0x25b4   :  { %1890 = vtanh.f32 %v1253_v42 }
0x25be   :  { %v1891_v43 = vpop.eup %1890 }
0x25bf   :  { %1256 = vrot.lane.b32.xlu1 %v1891_v43, %s1962_s30 }
0x2631   :  { %v1257_v44 = vpop.permute.xlu1 %1256 }
0x2632   :  { %v1259_v45 = vmul.f32 %v1889_v38, %v1257_v44 }
0x2634   :  { %v1261_v47 = vpack.c.bf16 %v1259_v45, %v1259_v45 }
0x2636   :  { %1263 = vrot.lane.b32.xlu0 %v1261_v47, %s1963_s15 }
0x26a8   :  { %v1264_v48 = vpop.permute.xlu0 %1263 }
0x26a9   :  { %1753 = vmatmul.mubr.msk.bf16.vlgmr.msra.gmra.mrb[32].mxu0 %vm68_vm1, %v1264_v48 }
0x26aa   :  { %1768 = vmatprep.mubr.msk.bf16.mxu0 %vm1961_vm0, %v1960_v4  ;;  %1765 = vmatpush3.bf16.msra.mxu0 %v1423_v28 }
0x26ab   :  { %1766 = vmatprep.subr.bf16.mxu0 %v1960_v4 }
0x26ae   :  { %1767 = vmatpush3.bf16.msra.mxu0 %v1424_v30 }
0x277c   :  { %v1302_v51 = vpop.f32.mrb[32].mxu0 }
0x277d   :  { %v1308_v52 = vadd.f32 %v1302_v51, %v1260_v50  ;;  %v1754_v53 = vpop.f32.mrb[33].mxu0 }
0x277e   :  { %v1305_v54 = vpop.f32.mrb[34].mxu0 }
0x277f   :  { %1892 = vtanh.f32 %v1308_v52  ;;  %v1755_v55 = vpop.f32.mrb[35].mxu0  ;;  %v1557_v57 = vmul.f32 -1.442695, %v1308_v52 }
0x2781   :  { %1894 = vpow2.f32 %v1557_v57 }
0x2789   :  { %v1893_v56 = vpop.eup %1892 }
0x278a   :  { %1318 = vrot.lane.b32.xlu1 %v1893_v56, %s1962_s30 }
0x278b   :  { %v1895_v58 = vpop.eup %1894 }
0x278c   :  { %v1312_v59 = vadd.f32 1.0, %v1895_v58 }
0x278e   :  { %1896 = vrcp.f32 %v1312_v59 }
0x2798   :  { %v1897_v60 = vpop.eup %1896 }
0x2799   :  { %v1316_v63 = vmul.f32 %v1897_v60, %v1253_v42 }
0x27fc   :  { %v1319_v61 = vpop.permute.xlu1 %1318 }
0x27fd   :  { %v1321_v62 = vmul.f32 %v1897_v60, %v1319_v61 }
0x27ff   :  { %1323 = vrot.lane.b32.xlu0 %v1321_v62, %s1963_s15 }
0x2871   :  { %v1324_v0 = vpop.permute.xlu0 %1323 }
0x2872   :  { %v1326_v1 = vadd.f32 %v1324_v0, %v1316_v63 }
0x2874   :  { %1898 = vtanh.f32 %v1326_v1 }
0x287e   :  { %v1899_v2 = vpop.eup %1898 }
0x287f   :  { %1329 = vrot.lane.b32.xlu1 %v1899_v2, %s1962_s30 }
0x28f1   :  { %v1330_v5 = vpop.permute.xlu1 %1329 }
0x28f2   :  { %v1332_v6 = vmul.f32 %v1897_v60, %v1330_v5 }
0x28f4   :  { %v1334_v7 = vpack.c.bf16 %v1332_v6, %v1332_v6 }
0x28f6   :  { %1336 = vrot.lane.b32.xlu0 %v1334_v7, %s1963_s15 }
0x2968   :  { %v1337_v9 = vpop.permute.xlu0 %1336 }
0x2969   :  { %1761 = vmatmul.mubr.msk.bf16.vlgmr.msra.gmra.mrb[32].mxu1 %vm68_vm1, %v1337_v9 }
0x2a3c   :  { %v1375_v12 = vpop.f32.mrb[32].mxu1 }
0x2a3d   :  { %v1381_v46 = vadd.f32 %v1375_v12, %v1333_v11  ;;  %v1762_v27 = vpop.f32.mrb[33].mxu1 }
0x2a3e   :  { %v1378_v8 = vpop.f32.mrb[34].mxu1 }
0x2a3f   :  { %1900 = vtanh.f32 %v1381_v46  ;;  %v1763_v14 = vpop.f32.mrb[35].mxu1  ;;  %v1559_v17 = vmul.f32 -1.442695, %v1381_v46 }
0x2a41   :  { %1902 = vpow2.f32 %v1559_v17 }
0x2a49   :  { %v1901_v16 = vpop.eup %1900 }
0x2a4a   :  { %1391 = vrot.lane.b32.xlu1 %v1901_v16, %s1962_s30 }
0x2a4b   :  { %v1903_v18 = vpop.eup %1902 }
0x2a4c   :  { %v1385_v3 = vadd.f32 1.0, %v1903_v18 }
0x2a4e   :  { %1904 = vrcp.f32 %v1385_v3 }
0x2a58   :  { %v1905_v49 = vpop.eup %1904 }
0x2a59   :  { %v1389_v21 = vmul.f32 %v1905_v49, %v1326_v1 }
0x2abc   :  { %v1392_v19 = vpop.permute.xlu1 %1391 }
0x2abd   :  { %v1394_v13 = vmul.f32 %v1905_v49, %v1392_v19 }
0x2abf   :  { %1396 = vrot.lane.b32.xlu0 %v1394_v13, %s1963_s15 }
0x2b31   :  { %v1397_v22 = vpop.permute.xlu0 %1396 }
0x2b32   :  { %v1399_v23 = vadd.f32 %v1397_v22, %v1389_v21 }
0x2b34   :  { %1906 = vtanh.f32 %v1399_v23 }
0x2b3e   :  { %v1907_v31 = vpop.eup %1906 }
0x2b3f   :  { %1402 = vrot.lane.b32.xlu1 %v1907_v31, %s1962_s30  ;;  %s1493_s30 = sshll.u32 %s1965_s3, 4  ;;  %s1494_s30 = int_to_ptr.vmem [resolvable:$true] %s1493_s30 }
0x2b40   :  { %s1912_s5 = scalar_lea.vmem %s1494_s30, 64  ;;  %p1917_p1 = scmp.lt.s32.totalorder %s1494_s30, %s1494_s30 }
0x2b41   :  { %p1913_p0 = scmp.ne.s32.totalorder %s1494_s30, %s1912_s5  ;;  %p1918_p2 = scmp.lt.s32.totalorder %s1912_s5, %s1912_s5 }
0x2b43   :  { %745 = vrot.lane.b32.xlu1 %v2213_v10, %s1964_s20  ;;  %p1919_p3 = por %p1918_p2, %p1917_p1 }
0x2b45   :  { %p1920_p4 = pnand %p1919_p3, %p1913_p0 }
0x2b47   :  { %1413 = vrot.lane.b32.xlu1 %v1399_v23, %s1964_s20 }
0x2bb1   :  { %v1403_v32 = vpop.permute.xlu1 %1402 }
0x2bb2   :  { %v1405_v33 = vmul.f32 %v1905_v49, %v1403_v32 }
0x2bb4   :  { %v1418_v34 = vpack.c.bf16 %v1405_v33, %v1405_v33 }
0x2bb5   :  { %v746_v35 = vpop.permute.xlu1 %745 }
0x2bb6   :  { %748 = vst.msk [vmem:[#allocation7] sm:$0x3] %vm195_vm2, %v746_v35  ;;  %1433 = vrot.lane.b32.xlu0 %v1418_v34, %s1963_s15 }
0x2bb9   :  { %v1414_v36 = vpop.permute.xlu1 %1413 }
0x2bba   :  { %1417 = vst.msk [vmem:[#allocation7 + $0x2] sm:$0x3] %vm195_vm2, %v1414_v36  ;;  %1407 = vrot.lane.b32.xlu0 %v1405_v33, %s1963_s15 }
0x2c28   :  { %v1434_v4 = vpop.permute.xlu0 %1433 }
0x2c29   :  { %1769 = vmatmul.mubr.msk.bf16.vlgmr.msra.gmra.mrb[36].mxu0 %vm68_vm1, %v1434_v4 }
0x2c2c   :  { %v1408_v20 = vpop.permute.xlu0 %1407 }
0x2c2d   :  { %1411 = vst.msk [vmem:[#allocation5 + $0x2] sm:$0x3] %vm195_vm2, %v1408_v20 }
0x2c2e   :  { %1923 = shalt.err (!%p1920_p4)
}
0x2c2f   :  { %s1924_s25 = scalar_lea.hbm %s2423_s12, 64 }
0x2c30   :  { %p1925_p5 = scmp.ne.s32.totalorder %s2423_s12, %s1924_s25  ;;  %p1928_p6 = scmp.lt.u32.totalorder %s1924_s25, %s2423_s12 }
0x2c32   :  { %p1930_p7 = pnand %p1928_p6, %p1925_p5 }
0x2c34   :  { %1933 = shalt.err (!%p1930_p7)
}
0x2c35   :  { %s1967_s29 = smov 2   ;;  %s1934_s7 = scalar_lea.vmem %s1506_s22, 64 }
0x2c36   :  { %1499 = dma.vmem_to_hbm [thread:$0]  %s1494_s30, 64, %s2423_s12, [#allocation6], %s1963_s15, %s1963_s15, %s1967_s29  }
0x2c37   :  { %p1935_p8 = scmp.ne.s32.totalorder %s1506_s22, %s1934_s7  ;;  %p1939_p9 = scmp.lt.s32.totalorder %s1506_s22, %s1506_s22 }
0x2c38   :  { %p1940_p10 = scmp.lt.s32.totalorder %s1934_s7, %s1934_s7 }
0x2c3a   :  { %p1941_p11 = por %p1940_p10, %p1939_p9 }
0x2c3c   :  { %p1942_p12 = pnand %p1941_p11, %p1935_p8 }
0x2c3e   :  { %1945 = shalt.err (!%p1942_p12)
}
0x2c3f   :  { %s1946_s9 = scalar_lea.hbm %s2424_s13, 64 }
0x2c40   :  { %p1947_p13 = scmp.ne.s32.totalorder %s2424_s13, %s1946_s9  ;;  %p1950_p0 = scmp.lt.u32.totalorder %s1946_s9, %s2424_s13 }
0x2c42   :  { %p1952_p1 = pnand %p1950_p0, %p1947_p13 }
0x2c44   :  { %1955 = shalt.err (!%p1952_p1)
}
0x2c45   :  { %1511 = dma.vmem_to_hbm [thread:$0]  %s1506_s22, 64, %s2424_s13, [#allocation8], %s1963_s15, %s1963_s15, %s1967_s29   ;;  %v1560_v10 = vld [vmem:[#allocation4] ss:$0 sm:$0xff]  ;;  %vm1484_vm3 = vcmask 1024  }
0x2cfc   :  { %v1472_v37 = vpop.f32.mrb[36].mxu0 }
0x2cfd   :  { %v1473_v38 = vadd.f32 %v1560_v10, %v1472_v37  ;;  %v1770_v39 = vpop.f32.mrb[37].mxu0 }
0x2cfe   :  { %v1475_v40 = vpop.f32.mrb[38].mxu0 }
0x2cff   :  { %v1562_v24 = vmul.f32 -1.442695, %v1473_v38  ;;  %v1771_v41 = vpop.f32.mrb[39].mxu0 }
0x2d01   :  { %1908 = vpow2.f32 %v1562_v24 }
0x2d0b   :  { %v1909_v42 = vpop.eup %1908 }
0x2d0c   :  { %v1481_v43 = vadd.f32 1.0, %v1909_v42 }
0x2d0e   :  { %1910 = vrcp.f32 %v1481_v43 }
0x2d18   :  { %v1911_v44 = vpop.eup %1910 }
0x2d19   :  { %1485 = vst.msk [vmem:[%s2422_s11] sm:$0x3] %vm1484_vm3, %v1911_v44 }
0x2d1a   :  { %1956 = dma.done.wait [#allocation6], 64  }
0x2d1b   :  { %1957 = vsyncadd [#allocation6], 4294967232 }
0x2d1c   :  { %1958 = dma.done.wait [#allocation8], 64  }
0x2d1d   :  { %1959 = vsyncadd [#allocation8], 4294967232 }
0x2d1e   :  { %1520 = vsyncpa [#allocation6], 1 }
0x2d1f   :  { %1521 = vsyncpa [#allocation8], 1 }

</bundles_post_ra>
